<compile_context>
chip_gen: v7x
topology: tpu7x:2x2x1
jax: 0.10.0
libtpu: 0.0.40
codegen_flags: <defaults>
</compile_context>

<pallas_src>
import jax
import jax.numpy as jnp
from jax.experimental import pallas as pl
from jax.experimental.pallas import tpu as pltpu


def _conv_bn_add_kernel(x_ref, w_ref, gamma_ref, beta_ref, r_ref, o_ref):
    # 1x1 conv over one C_out tile: bf16 MXU matmul, f32 accumulation.
    y = jnp.dot(x_ref[...], w_ref[...], preferred_element_type=jnp.float32)  # (rows, tn) f32

    # BatchNorm2d training semantics: per-channel batch mean / biased variance
    # over all rows (N * H_out * W_out).  Two-pass centered form for stability.
    mean = jnp.mean(y, axis=0, keepdims=True)                    # (1, tn)
    centered = y - mean
    var = jnp.mean(centered * centered, axis=0, keepdims=True)   # (1, tn), biased

    # Fold the affine into a per-channel scale/shift (rsqrt on a (1, tn) row).
    scale = gamma_ref[...] * jax.lax.rsqrt(var + 1e-5)           # (1, tn)
    shift = beta_ref[...] - mean * scale                         # (1, tn)

    # y*scale + shift + residual : 3 per-element VPU ops on the (rows, tn) tile.
    o_ref[...] = (y * scale + shift + r_ref[...]).astype(o_ref.dtype)


def conv_bn_add(x_nchw, w_conv, gamma, beta, residual_nchw, stride=2, tile_n=384):
    """x_nchw: (N, C_in, H, W); w_conv: (C_out, C_in, 1, 1);
    gamma/beta: (C_out,); residual_nchw: (N, C_out, H_out, W_out)."""
    N, C_in, H, W = x_nchw.shape
    C_out = w_conv.shape[0]
    H_out = (H - 1) // stride + 1
    W_out = (W - 1) // stride + 1
    rows = N * H_out * W_out

    # Pad C_out to a multiple of the tile width (1512 -> 1536, lane-aligned).
    n_tiles = pl.cdiv(C_out, tile_n)
    C_pad = n_tiles * tile_n
    pad = C_pad - C_out

    # Layout glue: stride-2 spatial subsampling + NCHW -> row-major (rows, C).
    # (allow_input_fusion lets XLA fold these into the pallas input DMAs.)
    x_sub = x_nchw[:, :, ::stride, ::stride]                                     # (N,Cin,Ho,Wo)
    x_mat = jnp.transpose(x_sub, (0, 2, 3, 1)).reshape(rows, C_in)
    x_mat = x_mat.astype(jnp.bfloat16)                                           # bf16 activations
    w_mat = jnp.transpose(w_conv.reshape(C_out, C_in), (1, 0)).astype(jnp.bfloat16)  # (Cin,Cout) bf16
    r_mat = jnp.transpose(residual_nchw, (0, 2, 3, 1)).reshape(rows, C_out)      # (rows,Cout) f32

    if pad:
        w_mat = jnp.pad(w_mat, ((0, 0), (0, pad)))
        r_mat = jnp.pad(r_mat, ((0, 0), (0, pad)))
        gamma_p = jnp.pad(gamma, (0, pad), constant_values=1.0)
        beta_p = jnp.pad(beta, (0, pad))
    else:
        gamma_p, beta_p = gamma, beta
    gamma2 = gamma_p.reshape(1, C_pad).astype(jnp.float32)
    beta2 = beta_p.reshape(1, C_pad).astype(jnp.float32)

    out_mat = pl.pallas_call(
        _conv_bn_add_kernel,
        out_shape=jax.ShapeDtypeStruct((rows, C_pad), jnp.float32),
        grid=(n_tiles,),
        in_specs=[
            pl.BlockSpec((rows, C_in), lambda j: (0, 0)),      # activations: resident across tiles
            pl.BlockSpec((C_in, tile_n), lambda j: (0, j)),    # weight tile (pipelined DMA)
            pl.BlockSpec((1, tile_n), lambda j: (0, j)),       # gamma tile
            pl.BlockSpec((1, tile_n), lambda j: (0, j)),       # beta tile
            pl.BlockSpec((rows, tile_n), lambda j: (0, j)),    # residual tile
        ],
        out_specs=pl.BlockSpec((rows, tile_n), lambda j: (0, j)),  # lane-dense (384) output
        compiler_params=pltpu.CompilerParams(
            dimension_semantics=("parallel",),                 # C_out tiles independent -> v7x dual-TC
            allow_input_fusion=[True, True, True, True, True],
        ),
    )(x_mat, w_mat, gamma2, beta2, r_mat)

    # Drop channel padding and return to NCHW.
    out_mat = out_mat[:, :C_out]
    return jnp.transpose(out_mat.reshape(N, H_out, W_out, C_out), (0, 3, 1, 2))


def _reference(x_nchw, w_conv, gamma, beta, residual_nchw, stride=2, eps=1e-5):
    """Pure-JAX reference with the same bf16 input rounding (f32 accumulation)."""
    N, C_in, H, W = x_nchw.shape
    C_out = w_conv.shape[0]
    x_sub = x_nchw[:, :, ::stride, ::stride]
    H_out, W_out = x_sub.shape[2], x_sub.shape[3]
    rows = N * H_out * W_out
    x_mat = jnp.transpose(x_sub, (0, 2, 3, 1)).reshape(rows, C_in)
    x_mat = x_mat.astype(jnp.bfloat16).astype(jnp.float32)
    w_mat = w_conv.reshape(C_out, C_in).T.astype(jnp.bfloat16).astype(jnp.float32)
    y = x_mat @ w_mat
    mean = jnp.mean(y, axis=0, keepdims=True)
    var = jnp.mean((y - mean) ** 2, axis=0, keepdims=True)
    y_hat = (y - mean) * jax.lax.rsqrt(var + eps)
    out = y_hat * gamma.reshape(1, -1) + beta.reshape(1, -1)
    out = out + jnp.transpose(residual_nchw, (0, 2, 3, 1)).reshape(rows, C_out)
    return jnp.transpose(out.reshape(N, H_out, W_out, C_out), (0, 3, 1, 2))


if __name__ == "__main__":
    key = jax.random.PRNGKey(0)
    k1, k2, k3 = jax.random.split(key, 3)

    N, C_in, H, W = 1, 576, 14, 14
    C_out = 1512

    # Deterministic inputs (channel counts fixed by the module).
    x329 = jax.random.normal(k1, (N, C_in, H, W), dtype=jnp.float32)
    x345 = jax.random.normal(k2, (N, C_out, 7, 7), dtype=jnp.float32)

    # Deterministic parameters (conv weight ~ N(0, 1/C_in); BN affine defaults).
    w_conv = jax.random.normal(k3, (C_out, C_in, 1, 1), dtype=jnp.float32) / jnp.sqrt(C_in)
    gamma = jnp.ones((C_out,), dtype=jnp.float32)
    beta = jnp.zeros((C_out,), dtype=jnp.float32)

    out = conv_bn_add(x329, w_conv, gamma, beta, x345, stride=2)
    jax.block_until_ready(out)
    assert out.shape == (N, C_out, 7, 7)

    ref = _reference(x329, w_conv, gamma, beta, x345, stride=2)
    max_err = float(jnp.max(jnp.abs(out - ref)))
    assert max_err < 2e-2, f"max abs error {max_err}"

    print("KERNEL_OK")
</pallas_src>

<mosaic_0001>
module attributes {stable_mosaic.version = 11 : i64} {
  func.func @_conv_bn_add_kernel(%arg0: i32, %arg1: memref<49x576xbf16, #tpu.memory_space<vmem>>, %arg2: memref<576x384xbf16, #tpu.memory_space<vmem>>, %arg3: memref<1x384xf32, #tpu.memory_space<vmem>>, %arg4: memref<1x384xf32, #tpu.memory_space<vmem>>, %arg5: memref<49x384xf32, #tpu.memory_space<vmem>>, %arg6: memref<49x384xf32, #tpu.memory_space<vmem>>) attributes {dimension_semantics = [#tpu.dimension_semantics<parallel>], iteration_bounds = array<i64: 4>, scalar_prefetch = 0 : i64, scratch_operands = 0 : i64, tpu.core_type = #tpu.core_type<tc>, window_params = [{pipeline_mode = #tpu.pipeline_mode<synchronous>, transform_indices = @transform_0, window_bounds = array<i64: 49, 576>}, {transform_indices = @transform_1, window_bounds = array<i64: 576, 384>}, {transform_indices = @transform_2, window_bounds = array<i64: 1, 384>}, {transform_indices = @transform_3, window_bounds = array<i64: 1, 384>}, {transform_indices = @transform_4, window_bounds = array<i64: 49, 384>}, {transform_indices = @transform_5, window_bounds = array<i64: 49, 384>}]} {
    %c0 = arith.constant 0 : index
    %c0_0 = arith.constant 0 : index
    %0 = vector.load %arg1[%c0, %c0_0] : memref<49x576xbf16, #tpu.memory_space<vmem>>, vector<49x576xbf16>
    %c0_1 = arith.constant 0 : index
    %c0_2 = arith.constant 0 : index
    %1 = vector.load %arg2[%c0_1, %c0_2] : memref<576x384xbf16, #tpu.memory_space<vmem>>, vector<576x384xbf16>
    %cst = arith.constant dense<0.000000e+00> : vector<49x384xf32>
    %2 = tpu.matmul %0, %1, %cst {dimension_numbers = #tpu.dot_dimension_numbers<[1], [0], [0], [1], [0, 0, 1, 1], [], []>} : vector<49x576xbf16>, vector<576x384xbf16>, vector<49x384xf32> -> vector<49x384xf32>
    %cst_3 = arith.constant dense<0.000000e+00> : vector<384xf32>
    %3 = vector.multi_reduction <add>, %2, %cst_3 [0] : vector<49x384xf32> to vector<384xf32>
    %4 = vector.shape_cast %3 : vector<384xf32> to vector<1x384xf32>
    %cst_4 = arith.constant 4.900000e+01 : f32
    %5 = vector.broadcast %cst_4 : f32 to vector<1x384xf32>
    %6 = arith.divf %4, %5 : vector<1x384xf32>
    %7 = vector.broadcast %6 : vector<1x384xf32> to vector<49x384xf32>
    %8 = arith.subf %2, %7 : vector<49x384xf32>
    %9 = arith.mulf %8, %8 : vector<49x384xf32>
    %cst_5 = arith.constant dense<0.000000e+00> : vector<384xf32>
    %10 = vector.multi_reduction <add>, %9, %cst_5 [0] : vector<49x384xf32> to vector<384xf32>
    %11 = vector.shape_cast %10 : vector<384xf32> to vector<1x384xf32>
    %cst_6 = arith.constant 4.900000e+01 : f32
    %12 = vector.broadcast %cst_6 : f32 to vector<1x384xf32>
    %13 = arith.divf %11, %12 : vector<1x384xf32>
    %c0_7 = arith.constant 0 : index
    %c0_8 = arith.constant 0 : index
    %14 = vector.load %arg3[%c0_7, %c0_8] : memref<1x384xf32, #tpu.memory_space<vmem>>, vector<1x384xf32>
    %cst_9 = arith.constant 9.99999974E-6 : f32
    %15 = vector.broadcast %cst_9 : f32 to vector<1x384xf32>
    %16 = arith.addf %13, %15 : vector<1x384xf32>
    %17 = math.rsqrt %16 : vector<1x384xf32>
    %18 = arith.mulf %14, %17 : vector<1x384xf32>
    %c0_10 = arith.constant 0 : index
    %c0_11 = arith.constant 0 : index
    %19 = vector.load %arg4[%c0_10, %c0_11] : memref<1x384xf32, #tpu.memory_space<vmem>>, vector<1x384xf32>
    %20 = arith.mulf %6, %18 : vector<1x384xf32>
    %21 = arith.subf %19, %20 : vector<1x384xf32>
    %22 = vector.broadcast %18 : vector<1x384xf32> to vector<49x384xf32>
    %23 = arith.mulf %2, %22 : vector<49x384xf32>
    %24 = vector.broadcast %21 : vector<1x384xf32> to vector<49x384xf32>
    %25 = arith.addf %23, %24 : vector<49x384xf32>
    %c0_12 = arith.constant 0 : index
    %c0_13 = arith.constant 0 : index
    %26 = vector.load %arg5[%c0_12, %c0_13] : memref<49x384xf32, #tpu.memory_space<vmem>>, vector<49x384xf32>
    %27 = arith.addf %25, %26 : vector<49x384xf32>
    %c0_14 = arith.constant 0 : index
    %c0_15 = arith.constant 0 : index
    %28 = vector.load %arg6[%c0_14, %c0_15] : memref<49x384xf32, #tpu.memory_space<vmem>>, vector<49x384xf32>
    tpu.vector_store %arg6[%c0_14, %c0_15], %27 {strides = array<i32>} : memref<49x384xf32, #tpu.memory_space<vmem>>, vector<49x384xf32>,
    return
  }
  func.func @transform_0(%arg0: i32) -> (i32, i32) {
    %c0_i32 = arith.constant 0 : i32
    %c0_i32_0 = arith.constant 0 : i32
    %c0_i32_1 = arith.constant 0 : i32
    return %c0_i32, %c0_i32_0 : i32, i32
  }
  func.func @transform_1(%arg0: i32) -> (i32, i32) {
    %c0_i32 = arith.constant 0 : i32
    %c0_i32_0 = arith.constant 0 : i32
    return %c0_i32, %arg0 : i32, i32
  }
  func.func @transform_2(%arg0: i32) -> (i32, i32) {
    %c0_i32 = arith.constant 0 : i32
    %c0_i32_0 = arith.constant 0 : i32
    return %c0_i32, %arg0 : i32, i32
  }
  func.func @transform_3(%arg0: i32) -> (i32, i32) {
    %c0_i32 = arith.constant 0 : i32
    %c0_i32_0 = arith.constant 0 : i32
    return %c0_i32, %arg0 : i32, i32
  }
  func.func @transform_4(%arg0: i32) -> (i32, i32) {
    %c0_i32 = arith.constant 0 : i32
    %c0_i32_0 = arith.constant 0 : i32
    return %c0_i32, %arg0 : i32, i32
  }
  func.func @transform_5(%arg0: i32) -> (i32, i32) {
    %c0_i32 = arith.constant 0 : i32
    %c0_i32_0 = arith.constant 0 : i32
    return %c0_i32, %arg0 : i32, i32
  }
}

</mosaic_0001>

<bundles_post_ra>
// kernel: tpu_custom_call.1
= control target key start
LH: loop header
LB: loop body
LE: loop exit
PB: predicated region body
PF: predicated region fallthrough
CT: control target
= control target key end

     0   :  { %s3652_s0 = inlined_call_operand.hbm [shape: bf16[49,576], index: 0, kind: input, shape index: {}]   ;;  %s3653_s1 = inlined_call_operand.hbm [shape: bf16[576,1536], index: 1, kind: input, shape index: {}]   ;;  %s3654_s2 = inlined_call_operand.hbm [shape: f32[1,1536], index: 2, kind: input, shape index: {}]   ;;  %s3655_s3 = inlined_call_operand.hbm [shape: f32[1,1536], index: 3, kind: input, shape index: {}]   ;;  %s3656_s4 = inlined_call_operand.hbm [shape: f32[49,1536], index: 4, kind: input, shape index: {}]   ;;  %s3657_s5 = inlined_call_operand.hbm [shape: f32[49,1536], index: 5, kind: output, shape index: {}]  }
   0x1   :  { %3669 = sst [smem:[#allocation18_spill]] %s3653_s1 }
   0x2   :  { %3670 = sst [smem:[#allocation19_spill]] %s3655_s3 }
   0x3   :  { %10 = vsyncpa [#allocation3], 0 }
   0x4   :  { %11 = vsyncpa [#allocation6], 0 }
   0x5   :  { %13 = vsyncpa [#allocation6 + $0x1], 0 }
   0x6   :  { %14 = vsyncpa [#allocation9], 0 }
   0x7   :  { %16 = vsyncpa [#allocation9 + $0x1], 0 }
   0x8   :  { %17 = vsyncpa [#allocation4], 0 }
   0x9   :  { %19 = vsyncpa [#allocation4 + $0x1], 0  ;;  %s2948_s18 = smov 0   ;;  %s2950_s19 = smov 0  }
   0xa   :  { %s2952_s20 = smov 0   ;;  %s2954_s21 = smov 0  }
   0xb LB: > { %3671 = sst [smem:[#allocation16_spill]] %s2893_s20  ;;  %s2969_s22 = sadd.s32 1, %s2897_s21   ;;  %s2897_s21 = sphi %s2954_s21, %s3698_s21   ;;  %s2893_s20 = sphi %s2952_s20, %s3695_s20   ;;  %s2889_s19 = sphi %s2950_s19, %s3697_s19   ;;  %s2885_s18 = sphi %s2948_s18, %s3696_s18  }
   0xc   : > { %s53_s23 = sadd.s32 1, %s2893_s20  ;;  %s50_s24 = ssub.s32 %s2897_s21, %s2969_s22 }
   0xd   : > { %p3658_p0 = scmp.ne.s32.totalorder %s2893_s20, %s2889_s19  ;;  %p51_p1 = scmp.eq.s32.totalorder %s50_s24, 0 }
   0xe   : > { %p61_p2 = scmp.eq.s32.totalorder %s2897_s21, 0  ;;  %p2450_p3 = scmp.lt.s32.totalorder %s2897_s21, 4 }
   0xf   : > { %s2979_s25 = scalar_select %p51_p1, %s2893_s20, %s53_s23  }
  0x10   : > { %p62_p4 = por %p61_p2, %p3658_p0  ;;  %s207_s26 = sand.u32 1, %s2897_s21  }
  0x11   : > { %3672 = sst [smem:[#allocation17_spill]] %s2979_s25  ;;  %s2986_s27 = sand.u32 1, %s2893_s20  }
  0x12   : > { %s2407_s28 = smul.u32 864, %s2986_s27  ;;  %p2989_p5 = pnand %p2450_p3, %p62_p4 }
  0x13   : > { %s2268_s30 = smul.u32 192, %s2897_s21  ;;  %s3674_s1 = sld [smem:[#allocation18_spill]] }
  0x14   : > { %s3673_s29 = scalar_select %p2989_p5, 1, 0 }
  0x15   : > { %s211_s9 = scalar_lea.vmem [#allocation5], %s2407_s28  ;;  %s2408_s11 = smul.u32 3, %s2986_s27 }
  0x16   : > { %s218_s10 = sshll.u32 %s211_s9, 4  ;;  %s3004_s12 = scalar_lea.sflag [#allocation6], %s207_s26  ;;  %s2999_s10 = int_to_ptr.vmem [resolvable:$true] %s218_s10 }
  0x17   : > { %p3010_p7 = pneg %p2989_p5 }
  0x19   : > { %s2997_s8 = scalar_lea.hbm %s3674_s1, %s2268_s30  ;;  %s2680_s17 = scalar_lea.hbm %s3674_s1, 55296 }
  0x1a   : > { %s2675_s13 = scalar_lea.hbm %s2997_s8, 13824  ;;  %p2681_p10 = scmp.lt.u32.totalorder %s2997_s8, %s3674_s1 }
  0x1b   : > { %p2676_p6 = scmp.ne.s32.totalorder %s2997_s8, %s2675_s13  ;;  %p2682_p11 = scmp.lt.u32.totalorder %s2680_s17, %s2675_s13 }
  0x1c   : > { %s3675_s14 = scalar_select %p3010_p7, 1, 0 }
  0x1d   : > { %p2678_p8 = pnand %p3010_p7, %p2676_p6  ;;  %p2683_p12 = por %p2682_p11, %p2681_p10 }
  0x1e   : > { %p2684_p13 = scmp.lt.u32.totalorder %s2675_s13, %s2997_s8 }
  0x1f   : > { %p2679_p9 = pneg %p2678_p8 }
  0x20   : > { %p2685_p1 = por %p2684_p13, %p2683_p12 }
  0x22   : > { %p2686_p2 = pnand %p2685_p1, %p2679_p9 }
  0x24   : > { %2689 = shalt.err (!%p2686_p2)
}
  0x25   : > { %s2690_s28 = scalar_lea.vmem %s2999_s10, 13824  ;;  %s2899_s30 = smov [#allocation5]  }
  0x26   : > { %p2691_p3 = scmp.ne.s32.totalorder %s2999_s10, %s2690_s28  ;;  %s2695_s6 = sshll.u32 %s2899_s30, 4  ;;  %s2696_s6 = int_to_ptr.vmem [resolvable:$false] %s2695_s6 }
  0x27   : > { %s2697_s7 = scalar_lea.vmem %s2696_s6, 27648  ;;  %p2698_p8 = scmp.lt.s32.totalorder %s2999_s10, %s2696_s6 }
  0x28   : > { %p2693_p4 = pnand %p2691_p3, %p3010_p7  ;;  %p2699_p0 = scmp.lt.s32.totalorder %s2697_s7, %s2690_s28 }
  0x2a   : > { %p2694_p6 = pneg %p2693_p4  ;;  %p2700_p10 = por %p2699_p0, %p2698_p8 }
  0x2c   : > { %p2701_p11 = pnand %p2700_p10, %p2694_p6 }
  0x2e   : > { %2704 = shalt.err (!%p2701_p11)
}
  0x2f   : > { %s2900_s9 = smov 768   ;;  %s2901_s13 = smov 192  }
  0x30   : > { %s2902_s15 = smov 12   ;;  %s2269_s16 = smul.u32 48, %s2897_s21 }
  0x31   : > { %2435 = dma.hbm_to_vmem [thread:$0]  (!%p2989_p5), %s2997_s8, 13824, %s2999_s10, %s3004_s12, %s2900_s9, %s2901_s13, %s2902_s15  }
  0x32   : > { %s3676_s3 = sld [smem:[#allocation19_spill]]  ;;  %s251_s28 = scalar_lea.vmem [#allocation8], %s2408_s11 }
  0x33   : > { %s259_s30 = sshll.u32 %s251_s28, 4  ;;  %s3046_s6 = scalar_lea.sflag [#allocation9], %s207_s26  ;;  %s260_s30 = int_to_ptr.vmem [resolvable:$true] %s259_s30 }
  0x38   : > { %s3040_s24 = scalar_lea.hbm %s3676_s3, %s2269_s16  ;;  %s2710_s9 = scalar_lea.hbm %s3676_s3, 192 }
  0x39   : > { %s2705_s7 = scalar_lea.hbm %s3040_s24, 48  ;;  %p2711_p13 = scmp.lt.u32.totalorder %s3040_s24, %s3676_s3 }
  0x3a   : > { %p2706_p0 = scmp.ne.s32.totalorder %s3040_s24, %s2705_s7  ;;  %p2712_p1 = scmp.lt.u32.totalorder %s2710_s9, %s2705_s7 }
  0x3b   : > { %p2714_p3 = scmp.lt.u32.totalorder %s2705_s7, %s3040_s24 }
  0x3c   : > { %p2708_p9 = pnand %p2706_p0, %p3010_p7  ;;  %p2713_p2 = por %p2712_p1, %p2711_p13 }
  0x3e   : > { %p2709_p12 = pneg %p2708_p9  ;;  %p2715_p4 = por %p2714_p3, %p2713_p2 }
  0x40   : > { %p2716_p6 = pnand %p2715_p4, %p2709_p12 }
  0x42   : > { %2719 = shalt.err (!%p2716_p6)
}
  0x43   : > { %s2720_s26 = scalar_lea.vmem %s260_s30, 48  ;;  %s2903_s17 = smov [#allocation8]  }
  0x44   : > { %p2721_p8 = scmp.ne.s32.totalorder %s260_s30, %s2720_s26  ;;  %s2725_s23 = sshll.u32 %s2903_s17, 4  ;;  %s2726_s23 = int_to_ptr.vmem [resolvable:$false] %s2725_s23 }
  0x45   : > { %s2727_s28 = scalar_lea.vmem %s2726_s23, 96  ;;  %p2728_p0 = scmp.lt.s32.totalorder %s260_s30, %s2726_s23 }
  0x46   : > { %p2723_p10 = pnand %p2721_p8, %p3010_p7  ;;  %p2729_p9 = scmp.lt.s32.totalorder %s2727_s28, %s2720_s26 }
  0x48   : > { %p2724_p11 = pneg %p2723_p10  ;;  %p2730_p5 = por %p2729_p9, %p2728_p0 }
  0x4a   : > { %p2731_p1 = pnand %p2730_p5, %p2724_p11 }
  0x4c   : > { %2734 = shalt.err (!%p2731_p1)
}
  0x4d   : > { %p3677_p13 = scmp.ne.s32.totalorder %s3673_s29, 0  ;;  %s3067_s7 = sadd.s32 4294967295, %s2897_s21  }
  0x4e   : > { %s2119_s8 = sadd.s32 4294967294, %s2897_s21   ;;  %p66_p5 = scmp.ne.s32.totalorder %s2889_s19, %s2885_s18 }
  0x4f   : > { %2441 = dma.hbm_to_vmem [thread:$0]  (!%p3677_p13), %s3040_s24, 48, %s260_s30, %s3046_s6  }
  0x50   : > { %p3661_p12 = scmp.eq.s32.totalorder %s3067_s7, 0  ;;  %p168_p2 = scmp.eq.s32.totalorder %s3067_s7, 3 }
  0x51   : > { %p174_p3 = scmp.eq.s32.totalorder %s2119_s8, 3  ;;  %p2120_p6 = scmp.ge.s32.totalorder %s2897_s21, 1 }
  0x52   : > { %p3076_p4 = por %p3661_p12, %p66_p5  ;;  %p3679_p8 = scmp.ne.s32.totalorder %s2893_s20, %s2889_s19 }
  0x53   : > { %p3088_p11 = por %p174_p3, %p66_p5  ;;  %p181_p0 = scmp.lt.s32.totalorder %s2897_s21, 5 }
  0x54   : > { %s3678_s10 = scalar_select %p3076_p4, 1, 0 }
  0x55   : > { %p3084_p10 = por %p168_p2, %p3679_p8  ;;  %p3093_p9 = pnand %p2120_p6, %p181_p0 }
  0x56   : > { %s3681_s30 = scalar_select %p3088_p11, 1, 0 }
  0x57   : > { %s3680_s24 = scalar_select %p3084_p10, 1, 0 }
  0x58   : > { %s3682_s9 = scalar_select %p3093_p9, 1, 0 }
  0x59   : > { %s2904_s13 = smov [#allocation2]   ;;  %p2428_p1 = pneg %p3093_p9 }
  0x5a   : > { %s193_s15 = sshll.u32 %s2904_s13, 4  ;;  %s3106_s23 = scalar_lea.hbm %s3654_s2, %s2269_s16  ;;  %s3097_s15 = int_to_ptr.vmem [resolvable:$true] %s193_s15 }
  0x5b   : > { %s232_s28 = scalar_lea.vmem [#allocation7], %s2408_s11  ;;  %p3112_p5 = pnand %p2428_p1, %p3661_p12 }
  0x5c   : > { %s240_s8 = sshll.u32 %s232_s28, 4  ;;  %s2735_s1 = scalar_lea.hbm %s3106_s23, 48  ;;  %s241_s8 = int_to_ptr.vmem [resolvable:$true] %s240_s8 }
  0x5d   : > { %s3683_s13 = scalar_select %p3112_p5, 1, 0 }
  0x5e   : > { %p2736_p2 = scmp.ne.s32.totalorder %s3106_s23, %s2735_s1  ;;  %s2740_s17 = scalar_lea.hbm %s3654_s2, 192 }
  0x5f   : > { %p2741_p8 = scmp.lt.u32.totalorder %s3106_s23, %s3654_s2  ;;  %p2742_p0 = scmp.lt.u32.totalorder %s2740_s17, %s2735_s1 }
  0x60   : > { %p2738_p3 = pnand %p2736_p2, %p3010_p7  ;;  %p2744_p1 = scmp.lt.u32.totalorder %s2735_s1, %s3106_s23 }
  0x61   : > { %p2743_p11 = por %p2742_p0, %p2741_p8 }
  0x62   : > { %p2739_p6 = pneg %p2738_p3 }
  0x63   : > { %p2745_p12 = por %p2744_p1, %p2743_p11 }
  0x65   : > { %p2746_p10 = pnand %p2745_p12, %p2739_p6 }
  0x67   : > { %2749 = shalt.err (!%p2746_p10)
}
  0x68   : > { %s2750_s11 = scalar_lea.vmem %s241_s8, 48  ;;  %s2905_s28 = smov [#allocation7]  }
  0x69   : > { %p2751_p4 = scmp.ne.s32.totalorder %s241_s8, %s2750_s11  ;;  %s2755_s20 = sshll.u32 %s2905_s28, 4  ;;  %s2756_s20 = int_to_ptr.vmem [resolvable:$false] %s2755_s20 }
  0x6a   : > { %s2757_s16 = scalar_lea.vmem %s2756_s20, 96  ;;  %p2758_p9 = scmp.lt.s32.totalorder %s241_s8, %s2756_s20 }
  0x6b   : > { %p2753_p2 = pnand %p2751_p4, %p3010_p7  ;;  %p2759_p5 = scmp.lt.s32.totalorder %s2757_s16, %s2750_s11 }
  0x6d   : > { %p2754_p3 = pneg %p2753_p2  ;;  %p2760_p13 = por %p2759_p5, %p2758_p9 }
  0x6f   : > { %p2761_p0 = pnand %p2760_p13, %p2754_p3 }
  0x71   : > { %2764 = shalt.err (!%p2761_p0)
}
  0x72   : > { %p3684_p8 = scmp.ne.s32.totalorder %s3673_s29, 0  ;;  %s2410_s1 = smul.u32 168, %s2986_s27 }
  0x73   : > { %s2765_s26 = scalar_lea.hbm %s3652_s0, 2240  ;;  %p3685_p4 = scmp.ne.s32.totalorder %s3683_s13, 0 }
  0x74   : > { %2438 = dma.hbm_to_vmem [thread:$0]  (!%p3684_p8), %s3106_s23, 48, %s241_s8, %s3004_s12  }
  0x75   : > { %p2766_p12 = scmp.ne.s32.totalorder %s3652_s0, %s2765_s26  ;;  %p2767_p10 = pneg %p3685_p4 }
  0x76   : > { %p2772_p9 = scmp.lt.u32.totalorder %s2765_s26, %s3652_s0 }
  0x77   : > { %p2768_p13 = pnand %p2767_p10, %p2766_p12 }
  0x79   : > { %p2769_p11 = pneg %p2768_p13 }
  0x7b   : > { %p2774_p5 = pnand %p2772_p9, %p2769_p11 }
  0x7d   : > { %2777 = shalt.err (!%p2774_p5)
}
  0x7e   : > { %s2778_s27 = scalar_lea.vmem %s3097_s15, 2240  ;;  %p2786_p3 = scmp.lt.s32.totalorder %s3097_s15, %s3097_s15 }
  0x7f   : > { %p2779_p6 = scmp.ne.s32.totalorder %s3097_s15, %s2778_s27  ;;  %p2787_p0 = scmp.lt.s32.totalorder %s2778_s27, %s2778_s27 }
  0x81   : > { %p2781_p1 = pnand %p2779_p6, %p2767_p10  ;;  %p2788_p8 = por %p2787_p0, %p2786_p3 }
  0x83   : > { %p2782_p2 = pneg %p2781_p1 }
  0x85   : > { %p2789_p7 = pnand %p2788_p8, %p2782_p2 }
  0x87   : > { %2792 = shalt.err (!%p2789_p7)
}
  0x88   : > { %s2906_s12 = smov 320   ;;  %s2907_s23 = smov 20  }
  0x89   : > { %2431 = dma.hbm_to_vmem [thread:$0]  (!%p3685_p4), %s3652_s0, 2240, %s3097_s15, [#allocation3], %s2906_s12, %s2906_s12, %s2907_s23  }
  0x8a   : > { %s2271_s3 = smul.u32 384, %s2897_s21  ;;  %s270_s25 = scalar_lea.vmem [#allocation10], %s2410_s1 }
  0x8b   : > { %s277_s26 = sshll.u32 %s270_s25, 4  ;;  %p3686_p8 = scmp.ne.s32.totalorder %s3675_s14, 0  ;;  %s3162_s26 = int_to_ptr.vmem [resolvable:$true] %s277_s26 }
  0x8c   : > { %s3160_s20 = scalar_lea.hbm %s3656_s4, %s2271_s3  ;;  %s2798_s1 = scalar_lea.hbm %s3656_s4, 10752 }
  0x8d   : > { %s2793_s11 = scalar_lea.hbm %s3160_s20, 2688  ;;  %p2799_p4 = scmp.lt.u32.totalorder %s3160_s20, %s3656_s4 }
  0x8e   : > { %p2794_p7 = scmp.ne.s32.totalorder %s3160_s20, %s2793_s11  ;;  %p2800_p13 = scmp.lt.u32.totalorder %s2798_s1, %s2793_s11 }
  0x8f   : > { %p2802_p9 = scmp.lt.u32.totalorder %s2793_s11, %s3160_s20 }
  0x90   : > { %p2796_p12 = pnand %p2794_p7, %p3686_p8  ;;  %p2801_p11 = por %p2800_p13, %p2799_p4 }
  0x92   : > { %p2797_p10 = pneg %p2796_p12  ;;  %p2803_p5 = por %p2802_p9, %p2801_p11 }
  0x94   : > { %p2804_p6 = pnand %p2803_p5, %p2797_p10 }
  0x96   : > { %2807 = shalt.err (!%p2804_p6)
}
  0x97   : > { %s2808_s23 = scalar_lea.vmem %s3162_s26, 2688  ;;  %s2908_s8 = smov [#allocation10]  }
  0x98   : > { %p2809_p1 = scmp.ne.s32.totalorder %s3162_s26, %s2808_s23  ;;  %s2813_s16 = sshll.u32 %s2908_s8, 4  ;;  %s2814_s16 = int_to_ptr.vmem [resolvable:$false] %s2813_s16 }
  0x99   : > { %s2815_s3 = scalar_lea.vmem %s2814_s16, 5376  ;;  %p2816_p0 = scmp.lt.s32.totalorder %s3162_s26, %s2814_s16 }
  0x9a   : > { %p2811_p2 = pnand %p2809_p1, %p3686_p8  ;;  %p2817_p7 = scmp.lt.s32.totalorder %s2815_s3, %s2808_s23 }
  0x9c   : > { %p2812_p3 = pneg %p2811_p2  ;;  %p2818_p12 = por %p2817_p7, %p2816_p0 }
  0x9e   : > { %p2819_p4 = pnand %p2818_p12, %p2812_p3 }
  0xa0   : > { %2822 = shalt.err (!%p2819_p4)
}
  0xa1   : > { %s2909_s25 = smov 1536   ;;  %s2910_s17 = smov 384  }
  0xa2   : > { %s2911_s28 = smov 24   ;;  %p3687_p10 = scmp.ne.s32.totalorder %s3673_s29, 0 }
  0xa3   : > { %p3688_p8 = scmp.ne.s32.totalorder %s3682_s9, 0 }
  0xa4   : > { %2444 = dma.hbm_to_vmem [thread:$0]  (!%p3687_p10), %s3160_s20, 2688, %s3162_s26, %s3046_s6, %s2909_s25, %s2910_s17, %s2911_s28  }
  0xa5   : > { %289 = sbr.rel (%p3688_p8) target bundleno = 670 (0x29e), region = 40  ;;  %p3689_p13 = scmp.eq.s32.totalorder (!%p3688_p8), %s3067_s7, 0 }
  0xac   : > { %2868 = dma.done.wait (%p3689_p13), [#allocation3], 2240   ;;  %p3690_p11 = pmov %p3689_p13 }
  0xad   : > { %s295_s14 = sand.u32 1, %s3067_s7   ;;  %s3194_s11 = sand.u32 1, %s2889_s19  }
  0xae   : > { %2870 = vsyncadd (%p3690_p11), [#allocation3], 4294965056  ;;  %s2411_s15 = smul.u32 864, %s3194_s11  ;;  %s296_s13 = scalar_lea.sflag [#allocation6], %s295_s14 }
  0xaf   : > { %p3691_p9 = scmp.ne.s32.totalorder %s3678_s10, 0 }
  0xb0   : > { %s3197_s29 = scalar_lea.vmem [#allocation5], %s2411_s15 }
  0xb1   : > { %2872 = dma.done.wait (%p3691_p9), %s296_s13, 13872  }
  0xb2   : > { %2874 = vsyncadd (%p3691_p9), %s296_s13, 4294953424  ;;  %s2412_s6 = smul.u32 3, %s3194_s11  ;;  %s314_s26 = scalar_lea.sflag [#allocation9], %s295_s14 }
  0xb4   : > { %s3204_s9 = scalar_lea.vmem [#allocation7], %s2412_s6  ;;  %s3206_s20 = scalar_lea.vmem [#allocation8], %s2412_s6 }
  0xb5   : > { %2876 = dma.done.wait (%p3691_p9), %s314_s26, 2736  }
  0xb6   : > { %2878 = vsyncadd (%p3691_p9), %s314_s26, 4294964560  ;;  %v2912_v0 = vmov 0   ;;  %v2499_v1 = vld [vmem:[%s3197_s29 + $0x4] ss:$12 sps:$4 sm:$0xff]   ;;  %v2503_v3 = vld [vmem:[%s3197_s29] ss:$12 sps:$4 sm:$0xff]  }
  0xb7   : > { %1394 = vmatprep.mubr.bf16.mxu1 %v2912_v0  ;;  %v2501_v2 = vld [vmem:[%s3197_s29 + $0x304] ss:$12 sps:$4 sm:$0xff]   ;;  %1220 = vmatprep.subr.bf16.mxu0 %v2499_v1  ;;  %v2504_v4 = vld [vmem:[%s3197_s29 + $0x300] ss:$12 sps:$4 sm:$0xff]   ;;  %v2505_v5 = vld [vmem:[%s3197_s29 + $0x1c] ss:$12 sps:$4 sm:$0xff]  }
  0xb8   : > { %1362 = vmatprep.subr.bf16.mxu1 %v2501_v2  ;;  %1221 = vmatpush1.bf16.msra.mxu0 %v2503_v3  ;;  %v2507_v6 = vld [vmem:[%s3197_s29 + $0x31c] ss:$12 sps:$4 sm:$0xff]   ;;  %v2509_v7 = vld [vmem:[%s3197_s29 + $0x18] ss:$12 sps:$4 sm:$0xff]   ;;  %v2511_v9 = vld [vmem:[%s3197_s29 + $0x34] ss:$12 sps:$4 sm:$0xff]  }
  0xb9   : > { %1363 = vmatpush1.bf16.msra.mxu1 %v2504_v4  ;;  %1222 = vmatprep.subr.bf16.mxu0 %v2505_v5  ;;  %v2510_v8 = vld [vmem:[%s3197_s29 + $0x318] ss:$12 sps:$4 sm:$0xff]   ;;  %v2513_v10 = vld [vmem:[%s3197_s29 + $0x334] ss:$12 sps:$4 sm:$0xff]   ;;  %v2515_v11 = vld [vmem:[%s3197_s29 + $0x30] ss:$12 sps:$4 sm:$0xff]  }
  0xba   : > { %1364 = vmatprep.subr.bf16.mxu1 %v2507_v6  ;;  %v2516_v12 = vld [vmem:[%s3197_s29 + $0x330] ss:$12 sps:$4 sm:$0xff]   ;;  %v2517_v13 = vld [vmem:[%s3197_s29 + $0x4c] ss:$12 sps:$4 sm:$0xff]   ;;  %v2521_v15 = vld [vmem:[%s3197_s29 + $0x48] ss:$12 sps:$4 sm:$0xff]  }
  0xbb   : > { %v2519_v14 = vld [vmem:[%s3197_s29 + $0x34c] ss:$12 sps:$4 sm:$0xff]   ;;  %v2522_v16 = vld [vmem:[%s3197_s29 + $0x348] ss:$12 sps:$4 sm:$0xff]   ;;  %v2523_v17 = vld [vmem:[%s3197_s29 + $0x64] ss:$12 sps:$4 sm:$0xff]  }
  0xbc   : > { %1223 = vmatpush1.bf16.msra.mxu0 %v2509_v7  ;;  %v3230_v18 = vld [vmem:[#allocation2 + $0x10] ss:$20 sps:$4 sm:$0xff]   ;;  %v2526_v19 = vld [vmem:[%s3197_s29 + $0xc8] ss:$12 sps:$4 sm:$0xff]   ;;  %v2527_v20 = vld [vmem:[%s3197_s29 + $0x60] ss:$12 sps:$4 sm:$0xff]  }
  0xbd   : > { %1365 = vmatpush1.bf16.msra.mxu1 %v2510_v8  ;;  %1224 = vmatprep.subr.bf16.mxu0 %v2511_v9  ;;  %vm1207_vm0 = vcmask 523264   ;;  %v2528_v21 = vld [vmem:[%s3197_s29 + $0x8] ss:$12 sps:$4 sm:$0xff]   ;;  %v2531_v23 = vld [vmem:[%s3197_s29 + $0xe0] ss:$12 sps:$4 sm:$0xff]   ;;  %vm1630_vm1 = vcmask 1040384  }
  0xbe   : > { %1366 = vmatprep.subr.bf16.mxu1 %v2513_v10  ;;  %v2529_v22 = vld [vmem:[%s3197_s29 + $0x7c] ss:$12 sps:$4 sm:$0xff]   ;;  %v2532_v24 = vld [vmem:[%s3197_s29 + $0x78] ss:$12 sps:$4 sm:$0xff]   ;;  %v2533_v25 = vld [vmem:[%s3197_s29 + $0x20] ss:$12 sps:$4 sm:$0xff]  }
  0xbf   : > { %v2534_v26 = vld [vmem:[%s3197_s29 + $0x94] ss:$12 sps:$4 sm:$0xff]   ;;  %v2537_v27 = vld [vmem:[%s3197_s29 + $0xf8] ss:$12 sps:$4 sm:$0xff]   ;;  %v2538_v29 = vld [vmem:[%s3197_s29 + $0x90] ss:$12 sps:$4 sm:$0xff]  }
  0xc0   : > { %1225 = vmatpush1.bf16.msra.mxu0 %v2515_v11  ;;  %v3244_v28 = vld [vmem:[#allocation2 + $0x38] ss:$20 sps:$4 sm:$0xff]   ;;  %v2539_v30 = vld [vmem:[%s3197_s29 + $0x38] ss:$12 sps:$4 sm:$0xff]   ;;  %v2542_v32 = vld [vmem:[%s3197_s29 + $0x110] ss:$12 sps:$4 sm:$0xff]  }
  0xc1   : > { %1367 = vmatpush1.bf16.msra.mxu1 %v2516_v12  ;;  %1226 = vmatprep.subr.bf16.mxu0 %v2517_v13  ;;  %v2540_v31 = vld [vmem:[%s3197_s29 + $0xac] ss:$12 sps:$4 sm:$0xff]   ;;  %v2543_v33 = vld [vmem:[%s3197_s29 + $0xa8] ss:$12 sps:$4 sm:$0xff]   ;;  %v2544_v34 = vld [vmem:[%s3197_s29 + $0x50] ss:$12 sps:$4 sm:$0xff]  }
  0xc2   : > { %1368 = vmatprep.subr.bf16.mxu1 %v2519_v14  ;;  %v2545_v35 = vld [vmem:[%s3197_s29 + $0xc4] ss:$12 sps:$4 sm:$0xff]   ;;  %v2548_v36 = vld [vmem:[%s3197_s29 + $0x128] ss:$12 sps:$4 sm:$0xff]   ;;  %v2549_v38 = vld [vmem:[%s3197_s29 + $0xc0] ss:$12 sps:$4 sm:$0xff]  }
  0xc3   : > { %v3257_v37 = vld [vmem:[#allocation2 + $0x60] ss:$20 sps:$4 sm:$0xff]   ;;  %v2553_v41 = vld [vmem:[%s3197_s29 + $0x140] ss:$12 sps:$4 sm:$0xff]   ;;  %v2554_v42 = vld [vmem:[%s3197_s29 + $0xd8] ss:$12 sps:$4 sm:$0xff]  }
  0xc4   : > { %1227 = vmatpush1.bf16.msra.mxu0 %v2521_v15  ;;  %v2550_v39 = vld [vmem:[%s3197_s29 + $0x68] ss:$12 sps:$4 sm:$0xff]   ;;  %v2555_v43 = vld [vmem:[%s3197_s29 + $0x80] ss:$12 sps:$4 sm:$0xff]   ;;  %v2559_v45 = vld [vmem:[%s3197_s29 + $0x158] ss:$12 sps:$4 sm:$0xff]  }
  0xc5   : > { %1369 = vmatpush1.bf16.msra.mxu1 %v2522_v16  ;;  %1228 = vmatprep.subr.bf16.mxu0 %v2523_v17  ;;  %v2551_v40 = vld [vmem:[%s3197_s29 + $0xdc] ss:$12 sps:$4 sm:$0xff]   ;;  %v2556_v44 = vld [vmem:[%s3197_s29 + $0xf4] ss:$12 sps:$4 sm:$0xff]   ;;  %v2561_v48 = vld [vmem:[%s3197_s29 + $0x98] ss:$12 sps:$4 sm:$0xff]  }
  0xc6   : > { %2273 = vmatprep.subr.bf16.mxu1 %v2526_v19  ;;  %v3270_v46 = vld [vmem:[#allocation2 + $0x88] ss:$0 sps:$4 sm:$0x11]   ;;  %v2562_v49 = vld [vmem:[%s3197_s29 + $0x10c] ss:$12 sps:$4 sm:$0xff]   ;;  %s2413_s10 = smul.u32 168, %s3194_s11 }
  0xc7   : > { %v2560_v47 = vld [vmem:[%s3197_s29 + $0xf0] ss:$12 sps:$4 sm:$0xff]   ;;  %v2569_v51 = vld [vmem:[#allocation2 + $0x4] ss:$20 sps:$4 sm:$0xff]   ;;  %v2565_v52 = vld [vmem:[%s3197_s29 + $0x108] ss:$12 sps:$4 sm:$0xff]  }
  0xc8   : > { %2257 = vmatmul.mubr.msk.bf16.vlgmr.msra.gmra.mrb[0].mxu1 %vm1207_vm0, %v3230_v18  ;;  %1229 = vmatpush1.bf16.msra.mxu0 %v2527_v20  ;;  %v2564_v50 = vld [vmem:[%s3197_s29 + $0x170] ss:$12 sps:$4 sm:$0xff]   ;;  %v2572_v55 = vld [vmem:[%s3197_s29 + $0x248] ss:$12 sps:$4 sm:$0xff]   ;;  %v2573_v57 = vld [vmem:[%s3197_s29 + $0x120] ss:$12 sps:$4 sm:$0xff]  }
  0xc9   : > { %2274 = vmatpush3.bf16.msra.mxu1 %v2528_v21  ;;  %1230 = vmatprep.subr.bf16.mxu0 %v2529_v22  ;;  %v2566_v53 = vld [vmem:[%s3197_s29 + $0xb0] ss:$12 sps:$4 sm:$0xff]   ;;  %v2567_v56 = vld [vmem:[#allocation2] ss:$20 sps:$4 sm:$0xff]   ;;  %v2577_v60 = vld [vmem:[%s3197_s29 + $0x260] ss:$12 sps:$4 sm:$0xff]  }
  0xca   : > { %2275 = vmatprep.subr.bf16.mxu1 %v2531_v23  ;;  %1404 = vmatprep.mubr.bf16.mxu1 %v2912_v0  ;;  %v2570_v54 = vld [vmem:[%s3197_s29 + $0x124] ss:$12 sps:$4 sm:$0xff]   ;;  %v2574_v58 = vld [vmem:[%s3197_s29 + $0x188] ss:$12 sps:$4 sm:$0xff]   ;;  %v2579_v63 = vld [vmem:[%s3197_s29 + $0x1a0] ss:$12 sps:$4 sm:$0xff]  }
  0xcb   : > { %1252 = vmatprep.mubr.bf16.mxu0 %v2569_v51  ;;  %v2575_v59 = vld [vmem:[%s3197_s29 + $0x13c] ss:$12 sps:$4 sm:$0xff]   ;;  %v2580_v61 = vld [vmem:[#allocation2 + $0x2c] ss:$20 sps:$4 sm:$0xff]   ;;  %v2578_v62 = vld [vmem:[%s3197_s29 + $0x138] ss:$12 sps:$4 sm:$0xff]  }
  0xcc   : > { %1231 = vmatpush1.bf16.msra.mxu0 %v2532_v24  ;;  %v2585_v1 = vld [vmem:[%s3197_s29 + $0x278] ss:$12 sps:$4 sm:$0xff]   ;;  %v2584_v2 = vld [vmem:[#allocation2 + $0x28] ss:$20 sps:$4 sm:$0xff]   ;;  %v2591_v8 = vld [vmem:[%s3197_s29 + $0x168] ss:$12 sps:$4 sm:$0xff]  }
  0xcd   : > { %2276 = vmatpush3.bf16.msra.mxu1 %v2533_v25  ;;  %1232 = vmatprep.subr.bf16.mxu0 %v2534_v26  ;;  %v2586_v3 = vld [vmem:[%s3197_s29 + $0x150] ss:$12 sps:$4 sm:$0xff]   ;;  %v2587_v4 = vld [vmem:[%s3197_s29 + $0x1b8] ss:$12 sps:$4 sm:$0xff]   ;;  %v2599_v11 = vld [vmem:[%s3197_s29 + $0x2a8] ss:$12 sps:$4 sm:$0xff]  }
  0xce   : > { %2277 = vmatprep.subr.bf16.mxu1 %v2537_v27  ;;  %v2588_v5 = vld [vmem:[%s3197_s29 + $0x16c] ss:$12 sps:$4 sm:$0xff]   ;;  %v2590_v6 = vld [vmem:[%s3197_s29 + $0x290] ss:$12 sps:$4 sm:$0xff]   ;;  %v2600_v14 = vld [vmem:[%s3197_s29 + $0x1e8] ss:$12 sps:$4 sm:$0xff]  }
  0xcf   : > { %v2593_v7 = vld [vmem:[#allocation2 + $0x54] ss:$20 sps:$4 sm:$0xff]   ;;  %v2597_v10 = vld [vmem:[%s3197_s29 + $0x184] ss:$12 sps:$4 sm:$0xff]   ;;  %v2595_v12 = vld [vmem:[%s3197_s29 + $0x180] ss:$12 sps:$4 sm:$0xff]  }
  0xd0   : > { %2258 = vmatmul.mubr.msk.bf16.gmra.mrb[4].mxu1 %vm1207_vm0, %v3244_v28  ;;  %1233 = vmatpush1.bf16.msra.mxu0 %v2538_v29  ;;  %v2592_v9 = vld [vmem:[%s3197_s29 + $0x1d0] ss:$12 sps:$4 sm:$0xff]   ;;  %v2598_v13 = vld [vmem:[#allocation2 + $0x50] ss:$20 sps:$4 sm:$0xff]   ;;  %v2604_v16 = vld [vmem:[%s3197_s29 + $0x2c0] ss:$12 sps:$4 sm:$0xff]  }
  0xd1   : > { %2278 = vmatpush3.bf16.msra.mxu1 %v2539_v30  ;;  %1234 = vmatprep.subr.bf16.mxu0 %v2540_v31  ;;  %v2603_v15 = vld [vmem:[%s3197_s29 + $0x19c] ss:$12 sps:$4 sm:$0xff]   ;;  %v392_v17 = vld [vmem:[#allocation2 + $0x78] sm:$0x11]  ;;  %v2601_v20 = vld [vmem:[%s3197_s29 + $0x198] ss:$12 sps:$4 sm:$0xff]  }
  0xd2   : > { %2279 = vmatprep.subr.bf16.mxu1 %v2542_v32  ;;  %1414 = vmatprep.mubr.bf16.mxu1 %v2912_v0  ;;  %v2145_v19 = vcombine.high %v392_v17, %v392_v17  ;;  %v2605_v21 = vld [vmem:[%s3197_s29 + $0x200] ss:$12 sps:$4 sm:$0xff]   ;;  %v2611_v23 = vld [vmem:[%s3197_s29 + $0x2d8] ss:$12 sps:$4 sm:$0xff]   ;;  %v2607_v24 = vld [vmem:[%s3197_s29 + $0x1b0] ss:$12 sps:$4 sm:$0xff]   ;;  %v2144_v25 = vcombine.low %v392_v17, %v392_v17 }
  0xd3   : > { %v2609_v22 = vld [vmem:[%s3197_s29 + $0x1b4] ss:$12 sps:$4 sm:$0xff]   ;;  %v2612_v26 = vld [vmem:[%s3197_s29 + $0x218] ss:$12 sps:$4 sm:$0xff]   ;;  %v2616_v29 = vld [vmem:[%s3197_s29 + $0x2f0] ss:$12 sps:$4 sm:$0xff]  }
  0xd4   : > { %1235 = vmatpush1.bf16.msra.mxu0 %v2543_v33  ;;  %v2615_v27 = vld [vmem:[%s3197_s29 + $0x1cc] ss:$12 sps:$4 sm:$0xff]   ;;  %v2620_v30 = vld [vmem:[#allocation2 + $0xc] ss:$20 sps:$4 sm:$0xff]   ;;  %v2617_v32 = vld [vmem:[%s3197_s29 + $0x230] ss:$12 sps:$4 sm:$0xff]  }
  0xd5   : > { %2280 = vmatpush3.bf16.msra.mxu1 %v2544_v34  ;;  %1236 = vmatprep.subr.bf16.mxu0 %v2545_v35  ;;  %v2613_v31 = vld [vmem:[%s3197_s29 + $0x1c8] ss:$12 sps:$4 sm:$0xff]   ;;  %v2623_v33 = vld [vmem:[%s3197_s29 + $0x1e4] ss:$12 sps:$4 sm:$0xff]   ;;  %v2621_v35 = vld [vmem:[%s3197_s29 + $0x1e0] ss:$12 sps:$4 sm:$0xff]  }
  0xd6   : > { %2281 = vmatprep.subr.bf16.mxu1 %v2548_v36  ;;  %v3313_v34 = vld [vmem:[#allocation2 + $0x8] ss:$20 sps:$4 sm:$0xff]   ;;  %s3552_s1 = scalar_lea.vmem [#allocation10], %s2413_s10  ;;  %s2272_s27 = smul.u32 384, %s3067_s7 }
  0xd7   : > { %v3316_v36 = vld [vmem:[#allocation2 + $0x34] ss:$20 sps:$4 sm:$0xff]   ;;  %s3576_s12 = scalar_lea.vmem [#allocation11], %s2413_s10  ;;  %s1958_s7 = scalar_lea.sflag [#allocation4], %s3194_s11 }
  0xd8   : > { %2259 = vmatmul.mubr.msk.bf16.gmra.mrb[8].mxu1 %vm1207_vm0, %v3257_v37  ;;  %1237 = vmatpush1.bf16.msra.mxu0 %v2549_v38  ;;  %v2626_v38 = vld [vmem:[%s3197_s29 + $0x1fc] ss:$12 sps:$4 sm:$0xff]   ;;  %s1971_s23 = sshll.u32 %s3576_s12, 4  ;;  %s3593_s3 = scalar_lea.hbm %s3657_s5, %s2272_s27  ;;  %s3599_s23 = int_to_ptr.vmem [resolvable:$true] %s1971_s23 }
  0xd9   : > { %2282 = vmatpush3.bf16.msra.mxu1 %v2550_v39  ;;  %1238 = vmatprep.subr.bf16.mxu0 %v2551_v40  ;;  %v2642_v39 = vld [vmem:[%s3197_s29 + $0x308] ss:$12 sps:$4 sm:$0xff]   ;;  %v2624_v40 = vld [vmem:[%s3197_s29 + $0x1f8] ss:$12 sps:$4 sm:$0xff]   ;;  %s2823_s25 = scalar_lea.vmem %s3599_s23, 2688  ;;  %p3692_p6 = scmp.ne.s32.totalorder %s3680_s24, 0 }
  0xda   : > { %2283 = vmatprep.subr.bf16.mxu1 %v2553_v41  ;;  %1424 = vmatprep.mubr.bf16.mxu1 %v2912_v0  ;;  %v2582_v0 = vld [vmem:[%s3197_s29 + $0x154] ss:$12 sps:$4 sm:$0xff]   ;;  %p2824_p5 = scmp.ne.s32.totalorder %s3599_s23, %s2823_s25  ;;  %s2914_s17 = smov [#allocation11]  }
  0xdb   : > { %v2631_v41 = vld [vmem:[%s3197_s29 + $0x214] ss:$12 sps:$4 sm:$0xff]   ;;  %s2827_s28 = sshll.u32 %s2914_s17, 4  ;;  %s2828_s28 = int_to_ptr.vmem [resolvable:$false] %s2827_s28 }
  0xdc   : > { %1239 = vmatpush1.bf16.msra.mxu0 %v2554_v42  ;;  %v2646_v42 = vld [vmem:[%s3197_s29 + $0x320] ss:$12 sps:$4 sm:$0xff]   ;;  %p2825_p1 = pnand %p2824_p5, %p3692_p6  ;;  %s2829_s14 = scalar_lea.vmem %s2828_s28, 5376 }
  0xdd   : > { %2284 = vmatpush3.bf16.msra.mxu1 %v2555_v43  ;;  %1240 = vmatprep.subr.bf16.mxu0 %v2556_v44  ;;  %v2629_v43 = vld [vmem:[%s3197_s29 + $0x210] ss:$12 sps:$4 sm:$0xff]   ;;  %v3326_v44 = vld [vmem:[#allocation2 + $0x30] ss:$20 sps:$4 sm:$0xff]   ;;  %p2830_p3 = scmp.lt.s32.totalorder %s3599_s23, %s2828_s28  ;;  %p2831_p0 = scmp.lt.s32.totalorder %s2829_s14, %s2823_s25 }
  0xde   : > { %2285 = vmatprep.subr.bf16.mxu1 %v2559_v45  ;;  %v3328_v45 = vld [vmem:[#allocation2 + $0x5c] ss:$20 sps:$4 sm:$0xff]   ;;  %p2826_p2 = pneg %p2825_p1 }
  0xdf   : > { %p2832_p7 = por %p2831_p0, %p2830_p3 }
  0xe0   : > { %2260 = vmatmul.mubr.msk.bf16.gmra.mrb[12].mxu1 %vm1207_vm0, %v3270_v46  ;;  %1241 = vmatpush1.bf16.msra.mxu0 %v2560_v47  ;;  %v2652_v47 = vld [vmem:[%s3197_s29 + $0x338] ss:$12 sps:$4 sm:$0xff]  }
  0xe1   : > { %2286 = vmatpush3.bf16.msra.mxu1 %v2561_v48  ;;  %1242 = vmatprep.subr.bf16.mxu0 %v2562_v49  ;;  %v2635_v48 = vld [vmem:[%s3197_s29 + $0x22c] ss:$12 sps:$4 sm:$0xff]   ;;  %v2656_v49 = vld [vmem:[%s3197_s29 + $0x350] ss:$12 sps:$4 sm:$0xff]   ;;  %p2833_p12 = pnand %p2832_p7, %p2826_p2 }
  0xe2   : > { %2287 = vmatprep.subr.bf16.mxu1 %v2564_v50  ;;  %1465 = vmatprep.mubr.bf16.mxu1 %v2569_v51  ;;  %v2633_v50 = vld [vmem:[%s3197_s29 + $0x228] ss:$12 sps:$4 sm:$0xff]   ;;  %v2640_v51 = vld [vmem:[%s3197_s29 + $0x244] ss:$12 sps:$4 sm:$0xff]  }
  0xe4   : > { %1243 = vmatpush1.bf16.msra.mxu0 %v2565_v52  ;;  %v393_v52 = vld [vmem:[#allocation2 + $0x80] sm:$0x11] }
  0xe5   : > { %2288 = vmatpush3.bf16.msra.mxu1 %v2566_v53  ;;  %1244 = vmatprep.subr.bf16.mxu0 %v2570_v54  ;;  %v2641_v53 = vld [vmem:[#allocation2 + $0x58] ss:$20 sps:$4 sm:$0xff]  }
  0xe6   : > { %2313 = vmatprep.subr.bf16.mxu1 %v2572_v55  ;;  %v2638_v54 = vld [vmem:[%s3197_s29 + $0x240] ss:$12 sps:$4 sm:$0xff]   ;;  %v2147_v55 = vcombine.high %v393_v52, %v393_v52 }
  0xe8   : > { %1466 = vmatmul.mubr.bf16.vlgmr.msra.gmra.mrb[16].mxu1 %v2567_v56  ;;  %1245 = vmatpush1.bf16.msra.mxu0 %v2573_v57  ;;  %v2643_v57 = vld [vmem:[%s3197_s29 + $0x258] ss:$12 sps:$4 sm:$0xff]  }
  0xe9   : > { %2314 = vmatpush3.bf16.msra.mxu1 %v2574_v58  ;;  %1246 = vmatprep.subr.bf16.mxu0 %v2575_v59  ;;  %v2650_v58 = vld [vmem:[%s3197_s29 + $0x274] ss:$12 sps:$4 sm:$0xff]   ;;  %v2146_v59 = vcombine.low %v393_v52, %v393_v52 }
  0xea   : > { %2315 = vmatprep.subr.bf16.mxu1 %v2577_v60  ;;  %1473 = vmatprep.mubr.bf16.mxu1 %v2580_v61  ;;  %v2648_v60 = vld [vmem:[%s3197_s29 + $0x270] ss:$12 sps:$4 sm:$0xff]  }
  0xec   : > { %1247 = vmatpush1.bf16.msra.mxu0 %v2578_v62  ;;  %v2653_v62 = vld [vmem:[%s3197_s29 + $0x288] ss:$12 sps:$4 sm:$0xff]  }
  0xed   : > { %2316 = vmatpush3.bf16.msra.mxu1 %v2579_v63  ;;  %1248 = vmatprep.subr.bf16.mxu0 %v2582_v0  ;;  %v2659_v63 = vld [vmem:[%s3197_s29 + $0x2a4] ss:$12 sps:$4 sm:$0xff]   ;;  %v2657_v0 = vld [vmem:[%s3197_s29 + $0x2a0] ss:$12 sps:$4 sm:$0xff]  }
  0xee   : > { %2317 = vmatprep.subr.bf16.mxu1 %v2585_v1  ;;  %v2662_v1 = vld [vmem:[%s3197_s29 + $0x2bc] ss:$12 sps:$4 sm:$0xff]  }
  0xf0   : > { %1474 = vmatmul.mubr.bf16.gmra.mrb[20].mxu1 %v2584_v2  ;;  %1249 = vmatpush1.bf16.msra.mxu0 %v2586_v3  ;;  %v2665_v3 = vld [vmem:[%s3197_s29 + $0x2d4] ss:$12 sps:$4 sm:$0xff]  }
  0xf1   : > { %2318 = vmatpush3.bf16.msra.mxu1 %v2587_v4  ;;  %1250 = vmatprep.subr.bf16.mxu0 %v2588_v5  ;;  %v2668_v4 = vld [vmem:[%s3197_s29 + $0x2ec] ss:$12 sps:$4 sm:$0xff]   ;;  %v2666_v5 = vld [vmem:[%s3197_s29 + $0x2e8] ss:$12 sps:$4 sm:$0xff]  }
  0xf2   : > { %2319 = vmatprep.subr.bf16.mxu1 %v2590_v6  ;;  %1481 = vmatprep.mubr.bf16.mxu1 %v2593_v7 }
  0xf4   : > { %1251 = vmatpush1.bf16.msra.mxu0 %v2591_v8 }
  0xf5   : > { %2320 = vmatpush3.bf16.msra.mxu1 %v2592_v9  ;;  %1291 = vmatprep.subr.bf16.mxu0 %v2597_v10 }
  0xf6   : > { %2321 = vmatprep.subr.bf16.mxu1 %v2599_v11 }
  0xf7   : > { %1253 = vmatmul.mubr.bf16.vlgmr.msra.gmra.mrb[0].mxu0 %v2567_v56  ;;  %v2645_v56 = vld [vmem:[%s3197_s29 + $0x25c] ss:$12 sps:$4 sm:$0xff]  }
  0xf8   : > { %1482 = vmatmul.mubr.bf16.gmra.mrb[24].mxu1 %v2598_v13  ;;  %1292 = vmatpush1.bf16.msra.mxu0 %v2595_v12 }
  0xf9   : > { %2322 = vmatpush3.bf16.msra.mxu1 %v2600_v14  ;;  %1293 = vmatprep.subr.bf16.mxu0 %v2603_v15 }
  0xfa   : > { %2323 = vmatprep.subr.bf16.mxu1 %v2604_v16  ;;  %1489 = vmatprep.mubr.bf16.mxu1 %v2145_v19 }
  0xfb   : > { %1262 = vmatprep.mubr.bf16.mxu0 %v2580_v61  ;;  %v2655_v61 = vld [vmem:[%s3197_s29 + $0x28c] ss:$12 sps:$4 sm:$0xff]  }
  0xfc   : > { %1294 = vmatpush1.bf16.msra.mxu0 %v2601_v20 }
  0xfd   : > { %2324 = vmatpush3.bf16.msra.mxu1 %v2605_v21  ;;  %1295 = vmatprep.subr.bf16.mxu0 %v2609_v22 }
  0xfe   : > { %2325 = vmatprep.subr.bf16.mxu1 %v2611_v23 }
  0xff   : > { %1263 = vmatmul.mubr.bf16.gmra.mrb[4].mxu0 %v2584_v2  ;;  %v2660_v2 = vld [vmem:[%s3197_s29 + $0x2b8] ss:$12 sps:$4 sm:$0xff]  }
 0x100   : > { %1490 = vmatmul.mubr.bf16.gmra.mrb[28].mxu1 %v2144_v25  ;;  %1296 = vmatpush1.bf16.msra.mxu0 %v2607_v24 }
 0x101   : > { %2326 = vmatpush3.bf16.msra.mxu1 %v2612_v26  ;;  %1297 = vmatprep.subr.bf16.mxu0 %v2615_v27 }
 0x102   : > { %2327 = vmatprep.subr.bf16.mxu1 %v2616_v29  ;;  %1529 = vmatprep.mubr.bf16.mxu1 %v2620_v30 }
 0x103   : > { %1272 = vmatprep.mubr.bf16.mxu0 %v2593_v7 }
 0x104   : > { %1298 = vmatpush1.bf16.msra.mxu0 %v2613_v31 }
 0x105   : > { %2328 = vmatpush3.bf16.msra.mxu1 %v2617_v32  ;;  %1299 = vmatprep.subr.bf16.mxu0 %v2623_v33 }
 0x106   : > { %2361 = vmatprep.subr.bf16.mxu1 %v2642_v39 }
 0x107   : > { %1273 = vmatmul.mubr.bf16.gmra.mrb[8].mxu0 %v2598_v13 }
 0x108   : > { %1530 = vmatmul.mubr.bf16.vlgmr.msra.gmra.mrb[32].mxu1 %v3313_v34  ;;  %1300 = vmatpush1.bf16.msra.mxu0 %v2621_v35 }
 0x109   : > { %1537 = vmatprep.mubr.bf16.mxu1 %v3316_v36  ;;  %1301 = vmatprep.subr.bf16.mxu0 %v2626_v38 }
 0x10a   : > { %2362 = vmatpush3.bf16.msra.mxu1 %v2642_v39  ;;  %1282 = vmatprep.mubr.bf16.mxu0 %v2145_v19 }
 0x10b   : > { %2363 = vmatprep.subr.bf16.mxu1 %v2646_v42 }
 0x10c   : > { %1302 = vmatpush1.bf16.msra.mxu0 %v2624_v40 }
 0x10d   : > { %1303 = vmatprep.subr.bf16.mxu0 %v2631_v41 }
 0x10e   : > { %2364 = vmatpush3.bf16.msra.mxu1 %v2646_v42 }
 0x10f   : > { %2365 = vmatprep.subr.bf16.mxu1 %v2652_v47  ;;  %1283 = vmatmul.mubr.bf16.gmra.mrb[12].mxu0 %v2144_v25 }
 0x110   : > { %1538 = vmatmul.mubr.bf16.gmra.mrb[36].mxu1 %v3326_v44  ;;  %1304 = vmatpush1.bf16.msra.mxu0 %v2629_v43 }
 0x111   : > { %1545 = vmatprep.mubr.bf16.mxu1 %v3328_v45  ;;  %1305 = vmatprep.subr.bf16.mxu0 %v2635_v48 }
 0x112   : > { %2366 = vmatpush3.bf16.msra.mxu1 %v2652_v47  ;;  %1323 = vmatprep.mubr.bf16.mxu0 %v2620_v30 }
 0x113   : > { %2367 = vmatprep.subr.bf16.mxu1 %v2656_v49 }
 0x114   : > { %1306 = vmatpush1.bf16.msra.mxu0 %v2633_v50 }
 0x115   : > { %1307 = vmatprep.subr.bf16.mxu0 %v2640_v51 }
 0x116   : > { %2368 = vmatpush3.bf16.msra.mxu1 %v2656_v49 }
 0x118   : > { %1546 = vmatmul.mubr.bf16.gmra.mrb[40].mxu1 %v2641_v53  ;;  %1308 = vmatpush1.bf16.msra.mxu0 %v2638_v54 }
 0x119   : > { %1553 = vmatprep.mubr.bf16.mxu1 %v2147_v55  ;;  %1309 = vmatprep.subr.bf16.mxu0 %v2645_v56 }
 0x11c   : > { %1310 = vmatpush1.bf16.msra.mxu0 %v2643_v57 }
 0x11d   : > { %1311 = vmatprep.subr.bf16.mxu0 %v2650_v58 }
 0x120   : > { %1554 = vmatmul.mubr.bf16.gmra.mrb[44].mxu1 %v2146_v59  ;;  %1312 = vmatpush1.bf16.msra.mxu0 %v2648_v60 }
 0x121   : > { %2369 = vmatprep.mubr.msk.bf16.mxu1 %vm1207_vm0, %v3230_v18  ;;  %1313 = vmatprep.subr.bf16.mxu0 %v2655_v61  ;;  %v2663_v18 = vld [vmem:[%s3197_s29 + $0x2d0] ss:$12 sps:$4 sm:$0xff]  }
 0x124   : > { %1314 = vmatpush1.bf16.msra.mxu0 %v2653_v62 }
 0x125   : > { %1315 = vmatprep.subr.bf16.mxu0 %v2659_v63 }
 0x128   : > { %2370 = vmatmul.mubr.msk.bf16.vlgmr.msra.gmra.mrb[48].mxu1 %vm1207_vm0, %v3244_v28  ;;  %1316 = vmatpush1.bf16.msra.mxu0 %v2657_v0 }
 0x129   : > { %2373 = vmatprep.mubr.msk.bf16.mxu1 %vm1207_vm0, %v3257_v37  ;;  %1317 = vmatprep.subr.bf16.mxu0 %v2662_v1 }
 0x12c   : > { %1318 = vmatpush1.bf16.msra.mxu0 %v2660_v2 }
 0x12d   : > { %1319 = vmatprep.subr.bf16.mxu0 %v2665_v3 }
 0x130   : > { %2374 = vmatmul.mubr.msk.bf16.gmra.mrb[52].mxu1 %vm1207_vm0, %v3270_v46  ;;  %1320 = vmatpush1.bf16.msra.mxu0 %v2663_v18 }
 0x131   : > { %1321 = vmatprep.subr.bf16.mxu0 %v2668_v4 }
 0x134   : > { %1322 = vmatpush1.bf16.msra.mxu0 %v2666_v5 }
 0x137   : > { %1324 = vmatmul.mubr.bf16.vlgmr.msra.gmra.mrb[0].mxu0 %v3313_v34 }
 0x138   : > { %1333 = vmatprep.mubr.bf16.mxu0 %v3316_v36 }
 0x13f   : > { %1334 = vmatmul.mubr.bf16.gmra.mrb[4].mxu0 %v3326_v44 }
 0x140   : > { %1343 = vmatprep.mubr.bf16.mxu0 %v3328_v45 }
 0x147   : > { %1344 = vmatmul.mubr.bf16.gmra.mrb[8].mxu0 %v2641_v53 }
 0x148   : > { %1353 = vmatprep.mubr.bf16.mxu0 %v2147_v55 }
 0x14f   : > { %1354 = vmatmul.mubr.bf16.gmra.mrb[12].mxu0 %v2146_v59 }
 0x19b   : > { %v3364_v28 = vpop.f32.mrb[0].mxu1 }
 0x19c   : > { %v3366_v37 = vpop.f32.mrb[1].mxu1 }
 0x19d   : > { %v3368_v46 = vpop.f32.mrb[2].mxu1 }
 0x19e   : > { %v3370_v6 = vpop.f32.mrb[3].mxu1 }
 0x1a3   : > { %v3372_v7 = vpop.f32.mrb[4].mxu1 }
 0x1a4   : > { %v3374_v8 = vpop.f32.mrb[5].mxu1 }
 0x1a5   : > { %v3376_v9 = vpop.f32.mrb[6].mxu1 }
 0x1a6   : > { %v3378_v10 = vpop.f32.mrb[7].mxu1 }
 0x1ab   : > { %v3380_v11 = vpop.f32.mrb[8].mxu1 }
 0x1ac   : > { %v3382_v12 = vpop.f32.mrb[9].mxu1 }
 0x1ad   : > { %v3384_v13 = vpop.f32.mrb[10].mxu1 }
 0x1ae   : > { %v3386_v14 = vpop.f32.mrb[11].mxu1 }
 0x1b3   : > { %v3388_v15 = vpop.f32.mrb[12].mxu1 }
 0x1b4   : > { %v3390_v16 = vpop.f32.mrb[13].mxu1 }
 0x1b5   : > { %v1430_v17 = vpop.f32.mrb[14].mxu1 }
 0x1b6   : > { %v1431_v19 = vpop.f32.mrb[15].mxu1 }
 0x1bb   : > { %v2289_v20 = vpop.f32.mrb[16].mxu1 }
 0x1bc   : > { %v2290_v21 = vpop.f32.mrb[17].mxu1 }
 0x1bd   : > { %v2291_v22 = vadd.f32 %v2290_v21, %v2289_v20  ;;  %v2292_v23 = vpop.f32.mrb[18].mxu1 }
 0x1be   : > { %v2293_v24 = vpop.f32.mrb[19].mxu1 }
 0x1bf   : > { %v2294_v25 = vadd.f32 %v2293_v24, %v2292_v23 }
 0x1c3   : > { %v2295_v26 = vpop.f32.mrb[20].mxu1 }
 0x1c4   : > { %v2296_v27 = vpop.f32.mrb[21].mxu1 }
 0x1c5   : > { %v2297_v29 = vadd.f32 %v2296_v27, %v2295_v26  ;;  %v2298_v30 = vpop.f32.mrb[22].mxu1 }
 0x1c6   : > { %v2299_v31 = vpop.f32.mrb[23].mxu1 }
 0x1c7   : > { %v2300_v32 = vadd.f32 %v2299_v31, %v2298_v30 }
 0x1cb   : > { %v2301_v33 = vpop.f32.mrb[24].mxu1 }
 0x1cc   : > { %v2302_v34 = vpop.f32.mrb[25].mxu1 }
 0x1cd   : > { %v2303_v35 = vadd.f32 %v2302_v34, %v2301_v33  ;;  %v2304_v36 = vpop.f32.mrb[26].mxu1 }
 0x1ce   : > { %v2305_v38 = vpop.f32.mrb[27].mxu1 }
 0x1cf   : > { %v2306_v39 = vadd.f32 %v2305_v38, %v2304_v36 }
 0x1d3   : > { %v2307_v40 = vpop.f32.mrb[28].mxu1 }
 0x1d4   : > { %v2308_v41 = vpop.f32.mrb[29].mxu1 }
 0x1d5   : > { %v2309_v42 = vadd.f32 %v2308_v41, %v2307_v40  ;;  %v2310_v43 = vpop.f32.mrb[30].mxu1 }
 0x1d6   : > { %v2311_v44 = vpop.f32.mrb[31].mxu1 }
 0x1db   : > { %v2329_v45 = vpop.f32.mrb[32].mxu1 }
 0x1dc   : > { %v2330_v47 = vpop.f32.mrb[33].mxu1 }
 0x1dd   : > { %v2331_v48 = vadd.f32 %v2330_v47, %v2329_v45  ;;  %v2332_v49 = vpop.f32.mrb[34].mxu1 }
 0x1de   : > { %v2333_v50 = vpop.f32.mrb[35].mxu1 }
 0x1df   : > { %v2334_v51 = vadd.f32 %v2333_v50, %v2332_v49  ;;  %v1532_v52 = vadd.f32 %v2331_v48, %v2291_v22 }
 0x1e1   : > { %v1535_v53 = vadd.f32 %v2334_v51, %v2294_v25 }
 0x1e3   : > { %v2335_v54 = vpop.f32.mrb[36].mxu1 }
 0x1e4   : > { %v2336_v55 = vpop.f32.mrb[37].mxu1 }
 0x1e5   : > { %v2337_v56 = vadd.f32 %v2336_v55, %v2335_v54  ;;  %v2338_v57 = vpop.f32.mrb[38].mxu1 }
 0x1e6   : > { %v2339_v58 = vpop.f32.mrb[39].mxu1 }
 0x1e7   : > { %v2340_v59 = vadd.f32 %v2339_v58, %v2338_v57  ;;  %v1540_v60 = vadd.f32 %v2337_v56, %v2297_v29 }
 0x1e9   : > { %v1543_v61 = vadd.f32 %v2340_v59, %v2300_v32 }
 0x1eb   : > { %v2341_v62 = vpop.f32.mrb[40].mxu1 }
 0x1ec   : > { %v2342_v63 = vpop.f32.mrb[41].mxu1 }
 0x1ed   : > { %v2343_v0 = vadd.f32 %v2342_v63, %v2341_v62  ;;  %v2344_v1 = vpop.f32.mrb[42].mxu1 }
 0x1ee   : > { %v2345_v2 = vpop.f32.mrb[43].mxu1 }
 0x1ef   : > { %v2346_v3 = vadd.f32 %v2345_v2, %v2344_v1  ;;  %v1548_v18 = vadd.f32 %v2343_v0, %v2303_v35 }
 0x1f1   : > { %v1551_v4 = vadd.f32 %v2346_v3, %v2306_v39 }
 0x1f3   : > { %v2347_v5 = vpop.f32.mrb[44].mxu1 }
 0x1f4   : > { %v2348_v17 = vpop.f32.mrb[45].mxu1 }
 0x1f5   : > { %v2349_v19 = vadd.f32 %v2348_v17, %v2347_v5  ;;  %v2350_v20 = vpop.f32.mrb[46].mxu1 }
 0x1f6   : > { %v2351_v21 = vpop.f32.mrb[47].mxu1 }
 0x1f7   : > { %v1556_v22 = vadd.f32 %v2349_v19, %v2309_v42 }
 0x1fb   : > { %v2371_v23 = vpop.f32.mrb[48].mxu1 }
 0x1fc   : > { %v3392_v24 = vadd.f32 %v2371_v23, %v1540_v60  ;;  %v1595_v25 = vpop.f32.mrb[49].mxu1 }
 0x1fd   : > { %v3394_v26 = vadd.f32 %v1595_v25, %v1532_v52  ;;  %v2372_v27 = vpop.f32.mrb[50].mxu1 }
 0x1fe   : > { %v3396_v29 = vadd.f32 %v2372_v27, %v1543_v61  ;;  %v1598_v30 = vpop.f32.mrb[51].mxu1 }
 0x1ff   : > { %v3398_v31 = vadd.f32 %v1598_v30, %v1535_v53 }
 0x201   : > { %v1652_v32 = vadd.f32 %v3398_v31, %v3394_v26 }
 0x203   : > { %v1653_v33 = vadd.f32 %v1652_v32, %v3392_v24  ;;  %v2375_v34 = vpop.f32.mrb[52].mxu1 }
 0x204   : > { %v3403_v35 = vadd.f32 %v2375_v34, %v1556_v22  ;;  %v1611_v36 = vpop.f32.mrb[53].mxu1 }
 0x205   : > { %v3405_v38 = vadd.f32 %v1611_v36, %v1548_v18  ;;  %v1654_v39 = vadd.f32 %v1653_v33, %v3396_v29  ;;  %v2376_v40 = vpop.f32.mrb[54].mxu1 }
 0x206   : > { %v1614_v41 = vpop.f32.mrb[55].mxu1  ;;  %v1657_v45 = vsel %vm1630_vm1, %v3403_v35, 0.0 }
 0x207   : > { %v1655_v42 = vadd.f32 %v1654_v39, %v3405_v38  ;;  %v3409_v43 = vadd.f32 %v1614_v41, %v1551_v4 }
 0x209   : > { %v1656_v44 = vadd.f32 %v1655_v42, %v3409_v43 }
 0x20a   : > { %v1325_v48 = vpop.f32.mrb[0].mxu0 }
 0x20b   : > { %v1658_v47 = vadd.f32 %v1657_v45, %v1656_v44  ;;  %v3415_v49 = vadd.f32 %v3364_v28, %v1325_v48  ;;  %v1327_v50 = vpop.f32.mrb[1].mxu0 }
 0x20c   : > { %v3418_v52 = vadd.f32 %v3366_v37, %v1327_v50  ;;  %v1329_v53 = vpop.f32.mrb[2].mxu0 }
 0x20d   : > { %v1659_v51 = vrot.slane %v1658_v47, 4  ;;  %v3421_v54 = vadd.f32 %v3368_v46, %v1329_v53  ;;  %v1331_v55 = vpop.f32.mrb[3].mxu0 }
 0x20e   : > { %v3424_v57 = vadd.f32 %v3370_v6, %v1331_v55 }
 0x20f   : > { %v1660_v56 = vadd.f32 %v1659_v51, %v1658_v47 }
 0x210   : > { %v1639_v3 = vadd.f32 %v3424_v57, %v3418_v52 }
 0x211   : > { %v1661_v58 = vrot.slane %v1660_v56, 2 }
 0x212   : > { %v1335_v60 = vpop.f32.mrb[4].mxu0 }
 0x213   : > { %v1662_v59 = vadd.f32 %v1661_v58, %v1660_v56  ;;  %v3427_v28 = vadd.f32 %v3372_v7, %v1335_v60  ;;  %v1337_v61 = vpop.f32.mrb[5].mxu0  ;;  %v1625_v7 = vadd.f32 %v3421_v54, %v3415_v49 }
 0x214   : > { %v3430_v37 = vadd.f32 %v3374_v8, %v1337_v61  ;;  %v1339_v63 = vpop.f32.mrb[6].mxu0 }
 0x215   : > { %v1663_v62 = vrot.slane %v1662_v59, 1  ;;  %v3433_v46 = vadd.f32 %v3376_v9, %v1339_v63  ;;  %v1341_v0 = vpop.f32.mrb[7].mxu0  ;;  %v1626_v18 = vadd.f32 %v3427_v28, %v1625_v7 }
 0x216   : > { %v3436_v6 = vadd.f32 %v3378_v10, %v1341_v0  ;;  %v1640_v10 = vadd.f32 %v3430_v37, %v1639_v3 }
 0x217   : > { %v1664_v1 = vadd.f32 %v1663_v62, %v1662_v59  ;;  %v1627_v23 = vadd.f32 %v3433_v46, %v1626_v18 }
 0x218   : > { %v1641_v32 = vadd.f32 %v3436_v6, %v1640_v10 }
 0x219   : > { %v3438_v2 = vmul.f32 0.020408163, %v1664_v1 }
 0x21a   : > { %v1345_v4 = vpop.f32.mrb[8].mxu0 }
 0x21b   : > { %v1671_v8 = vsub.f32 %v3394_v26, %v3438_v2  ;;  %v1674_v9 = vsub.f32 %v3398_v31, %v3438_v2  ;;  %v3451_v5 = vadd.f32 %v3380_v11, %v1345_v4  ;;  %v1347_v17 = vpop.f32.mrb[9].mxu0  ;;  %v1677_v11 = vsub.f32 %v3392_v24, %v3438_v2 }
 0x21c   : > { %v1349_v19 = vpop.f32.mrb[10].mxu0  ;;  %v3455_v25 = vadd.f32 %v3382_v12, %v1347_v17  ;;  %v1680_v12 = vsub.f32 %v3396_v29, %v3438_v2  ;;  %v1686_v61 = vsub.f32 %v3409_v43, %v3438_v2  ;;  %v1689_v0 = vsub.f32 %v3403_v35, %v3438_v2 }
 0x21d   : > { %v1692_v20 = vmul.f32 %v1671_v8, %v1671_v8  ;;  %v1695_v21 = vmul.f32 %v1674_v9, %v1674_v9  ;;  %v1351_v22 = vpop.f32.mrb[11].mxu0  ;;  %v3458_v27 = vadd.f32 %v3384_v13, %v1349_v19  ;;  %v1628_v33 = vadd.f32 %v3451_v5, %v1627_v23 }
 0x21e   : > { %v3461_v30 = vadd.f32 %v3386_v14, %v1351_v22  ;;  %v1642_v36 = vadd.f32 %v3455_v25, %v1641_v32  ;;  %v1698_v40 = vmul.f32 %v1677_v11, %v1677_v11  ;;  %v1701_v55 = vmul.f32 %v1680_v12, %v1680_v12 }
 0x21f   : > { %v1737_v34 = vadd.f32 %v1695_v21, %v1692_v20  ;;  %v1629_v41 = vadd.f32 %v3458_v27, %v1628_v33  ;;  %v1707_v9 = vmul.f32 %v1686_v61, %v1686_v61  ;;  %v1710_v4 = vmul.f32 %v1689_v0, %v1689_v0 }
 0x220   : > { %v1643_v47 = vadd.f32 %v3461_v30, %v1642_v36 }
 0x221   : > { %v1738_v45 = vadd.f32 %v1737_v34, %v1698_v40  ;;  %v1742_v22 = vsel %vm1630_vm1, %v1710_v4, 0.0 }
 0x222   : > { %v1355_v39 = vpop.f32.mrb[12].mxu0 }
 0x223   : > { %v3471_v13 = vadd.f32 %v3388_v15, %v1355_v39  ;;  %v1357_v14 = vpop.f32.mrb[13].mxu0  ;;  %v1683_v15 = vsub.f32 %v3405_v38, %v3438_v2 }
 0x224   : > { %v3475_v42 = vadd.f32 %v3390_v16, %v1357_v14  ;;  %v1359_v44 = vpop.f32.mrb[14].mxu0  ;;  %v1739_v16 = vadd.f32 %v1738_v45, %v1701_v55 }
 0x225   : > { %v1631_v48 = vsel %vm1630_vm1, %v3471_v13, 0.0  ;;  %v1360_v50 = vpop.f32.mrb[15].mxu0  ;;  %v1704_v62 = vmul.f32 %v1683_v15, %v1683_v15 }
 0x226   : > { %v1632_v51 = vadd.f32 %v1631_v48, %v1629_v41  ;;  %v1644_v53 = vsel %vm1630_vm1, %v3475_v42, 0.0 }
 0x227   : > { %v1645_v56 = vadd.f32 %v1644_v53, %v1643_v47  ;;  %v1740_v7 = vadd.f32 %v1739_v16, %v1704_v62 }
 0x228   : > { %v1633_v58 = vrot.slane %v1632_v51, 4 }
 0x229   : > { %v1646_v59 = vrot.slane %v1645_v56, 4  ;;  %v1741_v17 = vadd.f32 %v1740_v7, %v1707_v9 }
 0x22a   : > { %v1634_v60 = vadd.f32 %v1633_v58, %v1632_v51 }
 0x22b   : > { %v1647_v63 = vadd.f32 %v1646_v59, %v1645_v56  ;;  %v1743_v11 = vadd.f32 %v1742_v22, %v1741_v17 }
 0x22c   : > { %v1635_v1 = vrot.slane %v1634_v60, 2 }
 0x22d   : > { %v1648_v3 = vrot.slane %v1647_v63, 2  ;;  %v1744_v14 = vrot.slane %v1743_v11, 4 }
 0x22e   : > { %v1636_v8 = vadd.f32 %v1635_v1, %v1634_v60 }
 0x22f   : > { %v1649_v18 = vadd.f32 %v1648_v3, %v1647_v63  ;;  %v1745_v59 = vadd.f32 %v1744_v14, %v1743_v11 }
 0x230   : > { %v1637_v10 = vrot.slane %v1636_v8, 1 }
 0x231   : > { %v1650_v19 = vrot.slane %v1649_v18, 1 }
 0x232   : > { %v1638_v20 = vadd.f32 %v1637_v10, %v1636_v8  ;;  %v1746_v10 = vrot.slane %v1745_v59, 2 }
 0x233   : > { %v1651_v21 = vadd.f32 %v1650_v19, %v1649_v18 }
 0x234   : > { %v3489_v23 = vmul.f32 0.020408163, %v1638_v20 }
 0x235   : > { %v3497_v36 = vmul.f32 0.020408163, %v1651_v21 }
 0x236   : > { %v1669_v32 = vsub.f32 %v3415_v49, %v3489_v23  ;;  %v1672_v33 = vsub.f32 %v3421_v54, %v3489_v23  ;;  %v1675_v34 = vsub.f32 %v3427_v28, %v3489_v23  ;;  %v1678_v39 = vsub.f32 %v3433_v46, %v3489_v23 }
 0x237   : > { %v1681_v41 = vsub.f32 %v3451_v5, %v3489_v23  ;;  %v1670_v47 = vsub.f32 %v3418_v52, %v3497_v36  ;;  %v1673_v48 = vsub.f32 %v3424_v57, %v3497_v36  ;;  %v1687_v50 = vsub.f32 %v3471_v13, %v3489_v23 }
 0x238   : > { %v1690_v12 = vmul.f32 %v1669_v32, %v1669_v32  ;;  %v1693_v40 = vmul.f32 %v1672_v33, %v1672_v33  ;;  %v1696_v44 = vmul.f32 %v1675_v34, %v1675_v34  ;;  %v1676_v51 = vsub.f32 %v3430_v37, %v3497_v36 }
 0x239   : > { %v1684_v53 = vsub.f32 %v3458_v27, %v3489_v23  ;;  %v1699_v15 = vmul.f32 %v1678_v39, %v1678_v39  ;;  %v1691_v56 = vmul.f32 %v1670_v47, %v1670_v47  ;;  %v1679_v58 = vsub.f32 %v3436_v6, %v3497_v36 }
 0x23a   : > { %v1711_v45 = vadd.f32 %v1693_v40, %v1690_v12  ;;  %v1694_v16 = vmul.f32 %v1673_v48, %v1673_v48  ;;  %v1702_v60 = vmul.f32 %v1681_v41, %v1681_v41  ;;  %v1708_v62 = vmul.f32 %v1687_v50, %v1687_v50 }
 0x23b   : > { %v1682_v63 = vsub.f32 %v3455_v25, %v3497_v36  ;;  %v1697_v0 = vmul.f32 %v1676_v51, %v1676_v51  ;;  %v1705_v7 = vmul.f32 %v1684_v53, %v1684_v53  ;;  %v1688_v8 = vsub.f32 %v3475_v42, %v3497_v36 }
 0x23c   : > { %v1712_v55 = vadd.f32 %v1711_v45, %v1696_v44  ;;  %v1724_v1 = vadd.f32 %v1694_v16, %v1691_v56  ;;  %v1685_v9 = vsub.f32 %v3461_v30, %v3497_v36  ;;  %v1700_v18 = vmul.f32 %v1679_v58, %v1679_v58 }
 0x23d   : > { %v1716_v19 = vsel %vm1630_vm1, %v1708_v62, 0.0  ;;  %v1703_v20 = vmul.f32 %v1682_v63, %v1682_v63  ;;  %v1709_v11 = vmul.f32 %v1688_v8, %v1688_v8  ;;  %v1747_v34 = vadd.f32 %v1746_v10, %v1745_v59 }
 0x23e   : > { %v1713_v61 = vadd.f32 %v1712_v55, %v1699_v15  ;;  %v1725_v4 = vadd.f32 %v1724_v1, %v1697_v0  ;;  %v1706_v32 = vmul.f32 %v1685_v9, %v1685_v9  ;;  %v2913_v1 = vmov 1966171168  }
 0x23f   : > { %v1729_v14 = vsel %vm1630_vm1, %v1709_v11, 0.0  ;;  %v1748_v44 = vrot.slane %v1747_v34, 1  ;;  %v1753_v11 = vld [vmem:[%s3204_s9] sm:$0x7] }
 0x240   : > { %v1714_v3 = vadd.f32 %v1713_v61, %v1702_v60  ;;  %v1726_v21 = vadd.f32 %v1725_v4, %v1700_v18 }
 0x241   : > { %v1749_v51 = vadd.f32 %v1748_v44, %v1747_v34 }
 0x242   : > { %v1715_v17 = vadd.f32 %v1714_v3, %v1705_v7  ;;  %v1727_v33 = vadd.f32 %v1726_v21, %v1703_v20  ;;  %v1765_v7 = vunpack.c.l.s4 %v2913_v1  ;;  %v1767_v3 = vlaneseq }
 0x243   : > { %v1752_v58 = vmul.f32 0.020408163, %v1749_v51 }
 0x244   : > { %v1717_v22 = vadd.f32 %v1716_v19, %v1715_v17  ;;  %v1728_v12 = vadd.f32 %v1727_v33, %v1706_v32  ;;  %v1766_v8 = vunpack.c.0.s8 %v1765_v7  ;;  %v1768_v9 = vshrl.u32 %v1767_v3, 7 }
 0x245   : > { %v1756_v62 = vadd.f32 1e-05, %v1752_v58 }
 0x246   : > { %v1718_v39 = vrot.slane %v1717_v22, 4  ;;  %v1730_v41 = vadd.f32 %v1729_v14, %v1728_v12  ;;  %v1769_v10 = vsub.s32 %v1766_v8, %v1768_v9  ;;  %v1792_v33 = vsub.s32 0, %v1768_v9  ;;  %v1897_v8 = vld [vmem:[%s3552_s1 + $0x18] sm:$0xff] }
 0x247   : > { %v1796_v34 = vsub.s32 1, %v1768_v9 }
 0x248   : > { %v1719_v40 = vadd.f32 %v1718_v39, %v1717_v22  ;;  %v1731_v47 = vrot.slane %v1730_v41, 4  ;;  %v1800_v39 = vsub.s32 2, %v1768_v9 }
 0x24a   : > { %v1720_v45 = vrot.slane %v1719_v40, 2  ;;  %v1732_v50 = vadd.f32 %v1731_v47, %v1730_v41 }
 0x24c   : > { %v1721_v48 = vadd.f32 %v1720_v45, %v1719_v40  ;;  %v1733_v15 = vrot.slane %v1732_v50, 2 }
 0x24e   : > { %v1722_v53 = vrot.slane %v1721_v48, 1  ;;  %v1734_v56 = vadd.f32 %v1733_v15, %v1732_v50  ;;  %v1788_v15 = vld [vmem:[%s3206_s20] sm:$0x7] }
 0x250   : > { %v1723_v55 = vadd.f32 %v1722_v53, %v1721_v48  ;;  %v1735_v60 = vrot.slane %v1734_v56, 1 }
 0x252   : > { %v1750_v16 = vmul.f32 0.020408163, %v1723_v55  ;;  %v1736_v61 = vadd.f32 %v1735_v60, %v1734_v56 }
 0x254   : > { %v1754_v59 = vadd.f32 1e-05, %v1750_v16  ;;  %v1751_v63 = vmul.f32 0.020408163, %v1736_v61 }
 0x256   : > { %2669 = vrsqrt.f32 %v1754_v59  ;;  %v1755_v0 = vadd.f32 1e-05, %v1751_v63 }
 0x257   : > { %2671 = vrsqrt.f32 %v1756_v62 }
 0x258   : > { %2673 = vrsqrt.f32 %v1755_v0 }
 0x260   : > { %v2670_v18 = vpop.eup %2669 }
 0x261   : > { %v2672_v4 = vpop.eup %2671 }
 0x262   : > { %v2674_v17 = vpop.eup %2673  ;;  %v1777_v20 = vrot.slane %v2672_v4, %v1769_v10 }
 0x263   : > { %v1763_v19 = vcombine.low %v2670_v18, %v2674_v17  ;;  %v1898_v17 = vld [vmem:[%s3552_s1 + $0x20] sm:$0xff] }
 0x265   : > { %v1770_v21 = vrot.slane %v1763_v19, %v1769_v10  ;;  %v1899_v19 = vld [vmem:[%s3552_s1 + $0x28] sm:$0xff] }
 0x267   : > { %v1778_v22 = vcombine.low %v1770_v21, %v1777_v20  ;;  %v1900_v20 = vld [vmem:[%s3552_s1 + $0x30] sm:$0xff] }
 0x269   : > { %v1785_v32 = vrot.slane %v1778_v22, %v1769_v10 }
 0x26b   : > { %v1787_v12 = vmul.f32 %v1785_v32, %v1753_v11 }
 0x26d   : > { %v1793_v40 = vrot.slane %v1787_v12, %v1792_v33  ;;  %v1797_v14 = vrot.slane %v1787_v12, %v1796_v34  ;;  %v1801_v41 = vrot.slane %v1787_v12, %v1800_v39 }
 0x26f   : > { %v1805_v44 = vmul.f32 %v1793_v40, %v3489_v23  ;;  %v1806_v45 = vmul.f32 %v1797_v14, %v3497_v36  ;;  %v1807_v47 = vmul.f32 %v1801_v41, %v3438_v2  ;;  %v1836_v55 = vmul.f32 %v3415_v49, %v1793_v40 }
 0x270   : > { %v1837_v56 = vmul.f32 %v3418_v52, %v1797_v14  ;;  %v1838_v16 = vmul.f32 %v1801_v41, %v3394_v26  ;;  %v1839_v60 = vmul.f32 %v3421_v54, %v1793_v40  ;;  %v1840_v23 = vmul.f32 %v3424_v57, %v1797_v14 }
 0x271   : > { %v1811_v48 = vcombine.low %v1805_v44, %v1806_v45  ;;  %v1825_v51 = vrot.slane %v1807_v47, %v1769_v10  ;;  %v1841_v36 = vmul.f32 %v1801_v41, %v3398_v31  ;;  %v1842_v2 = vmul.f32 %v3427_v28, %v1793_v40  ;;  %v1904_v44 = vld [vmem:[%s3552_s1 + $0x50] sm:$0xff]  ;;  %v1905_v45 = vld [vmem:[%s3552_s1 + $0x58] sm:$0xff]  ;;  %v1906_v47 = vld [vmem:[%s3552_s1 + $0x60] sm:$0xff] }
 0x272   : > { %v1843_v59 = vmul.f32 %v3430_v37, %v1797_v14  ;;  %v1844_v61 = vmul.f32 %v1801_v41, %v3392_v24  ;;  %v1845_v49 = vmul.f32 %v3433_v46, %v1793_v40  ;;  %v1846_v52 = vmul.f32 %v3436_v6, %v1797_v14 }
 0x273   : > { %v1818_v50 = vrot.slane %v1811_v48, %v1769_v10  ;;  %v1847_v63 = vmul.f32 %v1801_v41, %v3396_v29  ;;  %v1848_v26 = vmul.f32 %v3451_v5, %v1793_v40  ;;  %v1849_v54 = vmul.f32 %v3455_v25, %v1797_v14 }
 0x274   : > { %v1850_v31 = vmul.f32 %v1801_v41, %v3405_v38  ;;  %v1851_v57 = vmul.f32 %v3458_v27, %v1793_v40  ;;  %v1852_v28 = vmul.f32 %v3461_v30, %v1797_v14  ;;  %v1853_v46 = vmul.f32 %v1801_v41, %v3409_v43  ;;  %v1894_v38 = vld [vmem:[%s3552_s1] sm:$0xff] }
 0x275   : > { %v1826_v53 = vcombine.low %v1818_v50, %v1825_v51  ;;  %v1854_v6 = vmul.f32 %v3471_v13, %v1793_v40  ;;  %v1855_v29 = vmul.f32 %v3475_v42, %v1797_v14  ;;  %v1856_v5 = vmul.f32 %v1801_v41, %v3403_v35  ;;  %v1895_v13 = vld [vmem:[%s3552_s1 + $0x8] sm:$0xff]  ;;  %v1896_v42 = vld [vmem:[%s3552_s1 + $0x10] sm:$0xff] }
 0x276   : > { %v1907_v50 = vld [vmem:[%s3552_s1 + $0x68] sm:$0xff]  ;;  %v1908_v51 = vld [vmem:[%s3552_s1 + $0x70] sm:$0xff] }
 0x277   : > { %v1833_v58 = vrot.slane %v1826_v53, %v1769_v10  ;;  %v1909_v53 = vld [vmem:[%s3552_s1 + $0x78] sm:$0xff] }
 0x279   : > { %v1835_v62 = vsub.f32 %v1788_v15, %v1833_v58  ;;  %v1910_v58 = vld [vmem:[%s3552_s1 + $0x80] sm:$0xff] }
 0x27b   : > { %v1861_v37 = vrot.slane %v1835_v62, %v1792_v33  ;;  %v1865_v24 = vrot.slane %v1835_v62, %v1796_v34  ;;  %v1869_v0 = vrot.slane %v1835_v62, %v1800_v39  ;;  %v1901_v33 = vld [vmem:[%s3552_s1 + $0x38] sm:$0xff]  ;;  %v1902_v34 = vld [vmem:[%s3552_s1 + $0x40] sm:$0xff]  ;;  %v1903_v39 = vld [vmem:[%s3552_s1 + $0x48] sm:$0xff] }
 0x27c   : > { %v1914_v62 = vld [vmem:[%s3552_s1 + $0xa0] sm:$0x1] }
 0x27d   : > { %v1873_v1 = vadd.f32 %v1861_v37, %v1836_v55  ;;  %v1874_v7 = vadd.f32 %v1865_v24, %v1837_v56  ;;  %v1875_v25 = vadd.f32 %v1869_v0, %v1838_v16  ;;  %v1876_v3 = vadd.f32 %v1861_v37, %v1839_v60  ;;  %v1911_v16 = vld [vmem:[%s3552_s1 + $0x88] sm:$0xff]  ;;  %v1912_v60 = vld [vmem:[%s3552_s1 + $0x90] sm:$0x1] }
 0x27e   : > { %v1877_v43 = vadd.f32 %v1865_v24, %v1840_v23  ;;  %v1878_v27 = vadd.f32 %v1869_v0, %v1841_v36  ;;  %v1879_v30 = vadd.f32 %v1861_v37, %v1842_v2  ;;  %v1880_v35 = vadd.f32 %v1865_v24, %v1843_v59 }
 0x27f   : > { %v1881_v9 = vadd.f32 %v1869_v0, %v1844_v61  ;;  %v1882_v18 = vadd.f32 %v1861_v37, %v1845_v49  ;;  %v1883_v4 = vadd.f32 %v1865_v24, %v1846_v52  ;;  %v1884_v10 = vadd.f32 %v1869_v0, %v1847_v63  ;;  %v1913_v61 = vld [vmem:[%s3552_s1 + $0x98] sm:$0x1] }
 0x280   : > { %v1885_v21 = vadd.f32 %v1861_v37, %v1848_v26  ;;  %v1886_v22 = vadd.f32 %v1865_v24, %v1849_v54  ;;  %v1887_v11 = vadd.f32 %v1869_v0, %v1850_v31  ;;  %v1888_v32 = vadd.f32 %v1861_v37, %v1851_v57 }
 0x281   : > { %v1889_v12 = vadd.f32 %v1865_v24, %v1852_v28  ;;  %v1890_v40 = vadd.f32 %v1869_v0, %v1853_v46  ;;  %v1891_v14 = vadd.f32 %v1861_v37, %v1854_v6  ;;  %v1892_v41 = vadd.f32 %v1865_v24, %v1855_v29 }
 0x282   : > { %v1893_v48 = vadd.f32 %v1869_v0, %v1856_v5  ;;  %v1915_v15 = vadd.f32 %v1894_v38, %v1873_v1  ;;  %v1916_v55 = vadd.f32 %v1895_v13, %v1874_v7  ;;  %v1917_v56 = vadd.f32 %v1896_v42, %v1875_v25 }
 0x283   : > { %v1918_v23 = vadd.f32 %v1897_v8, %v1876_v3  ;;  %v1919_v36 = vadd.f32 %v1898_v17, %v1877_v43  ;;  %v1920_v2 = vadd.f32 %v1899_v19, %v1878_v27  ;;  %v1921_v59 = vadd.f32 %v1900_v20, %v1879_v30 }
 0x284   : > { %v1922_v49 = vadd.f32 %v1901_v33, %v1880_v35  ;;  %v1923_v52 = vadd.f32 %v1902_v34, %v1881_v9  ;;  %v1924_v63 = vadd.f32 %v1903_v39, %v1882_v18  ;;  %v1925_v26 = vadd.f32 %v1904_v44, %v1883_v4  ;;  %1936 = vst [vmem:[%s3576_s12] sm:$0xff] %v1915_v15 }
 0x285   : > { %1937 = vst [vmem:[%s3576_s12 + $0x8] sm:$0xff] %v1916_v55  ;;  %1938 = vst [vmem:[%s3576_s12 + $0x10] sm:$0xff] %v1917_v56  ;;  %v1926_v54 = vadd.f32 %v1905_v45, %v1884_v10  ;;  %v1927_v31 = vadd.f32 %v1906_v47, %v1885_v21  ;;  %v1928_v57 = vadd.f32 %v1907_v50, %v1886_v22 }
 0x286   : > { %v1929_v28 = vadd.f32 %v1908_v51, %v1887_v11  ;;  %1939 = vst [vmem:[%s3576_s12 + $0x18] sm:$0xff] %v1918_v23  ;;  %1940 = vst [vmem:[%s3576_s12 + $0x20] sm:$0xff] %v1919_v36  ;;  %v1930_v37 = vadd.f32 %v1909_v53, %v1888_v32  ;;  %v1931_v24 = vadd.f32 %v1910_v58, %v1889_v12 }
 0x287   : > { %1941 = vst [vmem:[%s3576_s12 + $0x28] sm:$0xff] %v1920_v2  ;;  %1942 = vst [vmem:[%s3576_s12 + $0x30] sm:$0xff] %v1921_v59  ;;  %v1932_v0 = vadd.f32 %v1911_v16, %v1890_v40  ;;  %v1933_v46 = vadd.f32 %v1912_v60, %v1891_v14  ;;  %v1934_v6 = vadd.f32 %v1913_v61, %v1892_v41 }
 0x288   : > { %1943 = vst [vmem:[%s3576_s12 + $0x38] sm:$0xff] %v1922_v49  ;;  %1944 = vst [vmem:[%s3576_s12 + $0x40] sm:$0xff] %v1923_v52  ;;  %v1935_v29 = vadd.f32 %v1914_v62, %v1893_v48 }
 0x289   : > { %1945 = vst [vmem:[%s3576_s12 + $0x48] sm:$0xff] %v1924_v63  ;;  %1946 = vst [vmem:[%s3576_s12 + $0x50] sm:$0xff] %v1925_v26 }
 0x28a   : > { %1947 = vst [vmem:[%s3576_s12 + $0x58] sm:$0xff] %v1926_v54  ;;  %1948 = vst [vmem:[%s3576_s12 + $0x60] sm:$0xff] %v1927_v31 }
 0x28b   : > { %1949 = vst [vmem:[%s3576_s12 + $0x68] sm:$0xff] %v1928_v57  ;;  %1950 = vst [vmem:[%s3576_s12 + $0x70] sm:$0xff] %v1929_v28 }
 0x28c   : > { %1951 = vst [vmem:[%s3576_s12 + $0x78] sm:$0xff] %v1930_v37  ;;  %1952 = vst [vmem:[%s3576_s12 + $0x80] sm:$0xff] %v1931_v24 }
 0x28d   : > { %1953 = vst [vmem:[%s3576_s12 + $0x88] sm:$0xff] %v1932_v0  ;;  %1954 = vst [vmem:[%s3576_s12 + $0x90] sm:$0x1] %v1933_v46 }
 0x28e   : > { %1955 = vst [vmem:[%s3576_s12 + $0x98] sm:$0x1] %v1934_v6  ;;  %1956 = vst [vmem:[%s3576_s12 + $0xa0] sm:$0x1] %v1935_v29 }
 0x28f   : > { %2836 = shalt.err (!%p2833_p12)
}
 0x290   : > { %s2837_s15 = scalar_lea.hbm %s3593_s3, 2688  ;;  %s2841_s6 = scalar_lea.hbm %s3657_s5, 10752 }
 0x291   : > { %p2838_p4 = scmp.ne.s32.totalorder %s3593_s3, %s2837_s15  ;;  %p2842_p13 = scmp.lt.u32.totalorder %s3593_s3, %s3657_s5 }
 0x292   : > { %p2843_p11 = scmp.lt.u32.totalorder %s2841_s6, %s2837_s15  ;;  %p2845_p5 = scmp.lt.u32.totalorder %s2837_s15, %s3593_s3 }
 0x293   : > { %p2839_p10 = pnand %p2838_p4, %p3692_p6 }
 0x294   : > { %p2844_p9 = por %p2843_p11, %p2842_p13 }
 0x295   : > { %p2840_p8 = pneg %p2839_p10 }
 0x296   : > { %p2846_p1 = por %p2845_p5, %p2844_p9 }
 0x298   : > { %p2847_p2 = pnand %p2846_p1, %p2840_p8 }
 0x29a   : > { %2850 = shalt.err (!%p2847_p2)
}
 0x29b   : > { %s2915_s20 = smov 384   ;;  %s2916_s10 = smov 1536  }
 0x29c   : > { %s2917_s1 = smov 24  }
 0x29d   : > { %2426 = dma.vmem_to_hbm [thread:$0]  (%p3692_p6), %s3599_s23, 2688, %s3593_s3, %s1958_s7, %s2915_s20, %s2916_s10, %s2917_s1  }
 0x29e PF: > { %p2452_p3 = scmp.ge.s32.totalorder %s2897_s21, 2  ;;  %s1986_s27 = sand.u32 1, %s2885_s18  }
 0x29f   : > { %p3693_p0 = scmp.ne.s32.totalorder %s3681_s30, 0  ;;  %s1987_s12 = scalar_lea.sflag [#allocation4], %s1986_s27 }
 0x2a1   : > { %p2446_p7 = pnand %p2452_p3, %p3693_p0 }
 0x2a3   : > { %2880 = dma.done.wait (!%p2446_p7), %s1987_s12, 2688  }
 0x2a4   : > { %2882 = vsyncadd (!%p2446_p7), %s1987_s12, 4294964608  ;;  %s3694_s8 = sld [smem:[#allocation16_spill]]  ;;  %s3695_s20 = sld [smem:[#allocation17_spill]] }
 0x2a5   : > { %p22_p12 = scmp.ge.s32.totalorder %s2969_s22, 6   ;;  %s3696_s18 = smov %s2889_s19 }
 0x2a6   : > { %s3698_s21 = smov %s2969_s22 }
 0x2a7   :  { %24 = sbr.rel (!%p22_p12) target bundleno = 11 (0xb), region = 125 }
 0x2aa   : > { %s3697_s19 = smov %s3694_s8 }
 0x2ae   :  { %1992 = vsyncpa [#allocation3], 1 }
 0x2af   :  { %1994 = vsyncpa [#allocation3 + $0x1], 1 }
 0x2b0   :  { %1995 = vsyncpa [#allocation6], 1 }
 0x2b1   :  { %1997 = vsyncpa [#allocation6 + $0x1], 1 }
 0x2b2   :  { %1998 = vsyncpa [#allocation9], 1 }
 0x2b3   :  { %2000 = vsyncpa [#allocation9 + $0x1], 1 }
 0x2b4   :  { %2001 = vsyncpa [#allocation4], 1 }
 0x2b5   :  { %2003 = vsyncpa [#allocation4 + $0x1], 1 }

</bundles_post_ra>
